<compile_context>
chip_gen: v5e
topology: v5e:2x2
jax: 0.10.0
libtpu: 0.0.40
codegen_flags: <defaults>
</compile_context>

<pallas_src>
import functools
import math

import jax
import jax.numpy as jnp
from jax import lax
from jax.experimental import pallas as pl
from jax.experimental.pallas import tpu as pltpu

EPS = 1e-8
LANES = 128


def _round_up(x, m):
    return ((x + m - 1) // m) * m


# ----------------------------------------------------------------------------- fused kernel
def _fused_ff_kernel(z_ref, rm_ref, w0_ref, wr_ref, b_ref, wc_ref, stats_ref, *,
                     num_layers, batch_size, n_posneg, n_neutral, input_dim,
                     momentum, mm_dtype):
    """Single-program fused FF forward.

    Inputs (all VMEM-resident, one DMA each):
      z_ref  : (N, Kpad)       f32   [pos | neg | neutral] flattened images (zero-padded K)
      rm_ref : (L, H)          f32   running means
      w0_ref : (Kpad, H)       bf16  first-layer weight (rows >= input_dim are zero)
      wr_ref : ((L-1)*H, H)    bf16  stacked weights of layers 1..L-1
      b_ref  : (L, H)          f32   stacked biases
      wc_ref : ((L-1)*H, 10)   bf16  classifier weight (row block per feature layer)

    stats_ref (f32 (rows, 128)) layout:
      rows 0..2, lanes 0:L            ff loss / ff accuracy / peer loss per layer
      rows 3..3+L-1, lanes 0:H        updated running means
      rows 3+L..3+L+Bn-1, lanes 0:C   classifier logits (max-subtracted), neutral rows
    """
    f32 = jnp.float32
    L = num_layers
    B = batch_size
    Bn = n_neutral
    N = z_ref.shape[0]
    H = b_ref.shape[-1]
    C = wc_ref.shape[-1]

    # Masks / MXU reduction weights — built once, reused by every layer.
    row_ids = lax.broadcasted_iota(jnp.int32, (N, 1), 0)                     # (N, 1)
    lane_ids = lax.broadcasted_iota(jnp.int32, (1, N), 1)                    # (1, N)
    posneg_y = (row_ids < B).astype(f32)                   # label 1 for positive rows
    pn_w = jnp.where(lane_ids < n_posneg, 1.0 / n_posneg, 0.0).astype(f32)   # mean over pos+neg
    pos_w = jnp.where(lane_ids < B, 1.0 / B, 0.0).astype(f32)                # mean over pos rows

    # ---- initial layer norm (exact: z / (sqrt(mean(z^2)) + eps); pad lanes are zero) ----
    z = z_ref[...]
    ms = jnp.sum(z * z, axis=-1, keepdims=True) * (1.0 / input_dim)
    z = z / (jnp.sqrt(ms) + EPS)

    ff_losses, ff_accs, peer_losses, new_rms = [], [], [], []
    cls_out = None
    for l in range(L):
        if l == 0:
            w = w0_ref[...]
        else:
            w = wr_ref[(l - 1) * H:l * H, :]
        act = jnp.dot(z.astype(mm_dtype), w, preferred_element_type=f32) + b_ref[l:l + 1, :]
        act = jnp.maximum(act, 0.0)                        # ReLU (ReLU_full_grad forward)

        # ---- FF (BCE-with-logits) loss / accuracy over pos+neg rows ----
        # Cross-sublane means go through the MXU: (1,N) @ (N,1).
        sos = jnp.sum(act * act, axis=-1, keepdims=True)   # (N, 1)
        logits = sos - float(H)
        per_row = (jnp.maximum(logits, 0.0) - logits * posneg_y
                   + jnp.log1p(jnp.exp(-jnp.abs(logits))))            # stable BCE (log1p)
        correct = ((logits > 0.0) == (posneg_y > 0.5)).astype(f32)
        ff_losses.append(jnp.dot(pn_w, per_row, preferred_element_type=f32))   # (1, 1)
        ff_accs.append(jnp.dot(pn_w, correct, preferred_element_type=f32))     # (1, 1)

        # ---- peer normalization: column mean of positive rows via the MXU ----
        colmean = jnp.dot(pos_w, act, preferred_element_type=f32)              # (1, H)
        new_rm = rm_ref[l:l + 1, :] * momentum + colmean * (1.0 - momentum)
        new_rms.append(new_rm)
        rm_mean = jnp.sum(new_rm, axis=-1, keepdims=True) * (1.0 / H)
        diff = rm_mean - new_rm
        peer_losses.append(jnp.sum(diff * diff, axis=-1, keepdims=True) * (1.0 / H))

        # ---- layer norm feeding the next layer (exact eps placement) ----
        z = act / (jnp.sqrt(sos * (1.0 / H)) + EPS)

        # ---- downstream classifier: per-layer accumulation (no lane concat) ----
        if l >= 1:
            contrib = jnp.dot(z[n_posneg:n_posneg + Bn, :].astype(mm_dtype),
                              wc_ref[(l - 1) * H:l * H, :],
                              preferred_element_type=f32)                      # (Bn, C)
            cls_out = contrib if cls_out is None else cls_out + contrib

    # ---- three consolidated stores; unwritten lanes are never read by the wrapper ----
    scalars = jnp.concatenate(
        [jnp.concatenate(ff_losses, axis=-1),
         jnp.concatenate(ff_accs, axis=-1),
         jnp.concatenate(peer_losses, axis=-1)], axis=0)                       # (3, L)
    stats_ref[0:3, 0:L] = scalars
    stats_ref[3:3 + L, 0:H] = jnp.concatenate(new_rms, axis=0)                 # (L, H)
    cls_out = cls_out - jnp.max(cls_out, axis=-1, keepdims=True)
    stats_ref[3 + L:3 + L + Bn, 0:C] = cls_out                                 # (Bn, C)


# ----------------------------------------------------------------------------- wrappers
def pack_params(layers, Wc, *, input_dim, mm_dtype=jnp.bfloat16):
    """Cast / consolidate parameters ONCE (outside the jitted step): no per-call
    astype/reshape ops, and only 4 parameter arrays (DMAs) feed the kernel."""
    L = len(layers)
    H = layers[0][0].shape[1]
    k_pad = _round_up(input_dim, LANES)
    w0 = jnp.zeros((k_pad, H), mm_dtype).at[:input_dim, :].set(
        layers[0][0].astype(mm_dtype))                                   # (Kpad, H)
    w_rest = jnp.concatenate([layers[l][0] for l in range(1, L)],
                             axis=0).astype(mm_dtype)                    # ((L-1)*H, H)
    b_all = jnp.stack([layers[l][1].reshape(-1) for l in range(L)],
                      axis=0).astype(jnp.float32)                        # (L, H)
    wc = Wc.astype(mm_dtype)                                             # ((L-1)*H, 10)
    return {"w0": w0, "w_rest": w_rest, "b_all": b_all, "wc": wc}


def fused_ff_forward(z0, rm_mat, params, *, batch_size, n_posneg, n_neutral,
                     input_dim, momentum):
    L, H = rm_mat.shape
    C = params["wc"].shape[1]
    assert L >= 2 and H <= LANES and L <= LANES and C <= LANES
    mm_dtype = params["w0"].dtype
    n_rows = _round_up(3 + L + n_neutral, 8)
    vmem = pl.BlockSpec(memory_space=pltpu.MemorySpace.VMEM)

    kernel = functools.partial(
        _fused_ff_kernel, num_layers=L, batch_size=batch_size, n_posneg=n_posneg,
        n_neutral=n_neutral, input_dim=input_dim, momentum=momentum, mm_dtype=mm_dtype)

    return pl.pallas_call(
        kernel,
        out_shape=jax.ShapeDtypeStruct((n_rows, LANES), jnp.float32),
        in_specs=[vmem] * 6,
        out_specs=vmem,
        compiler_params=pltpu.CompilerParams(vmem_limit_bytes=32 * 1024 * 1024),
    )(z0, rm_mat, params["w0"], params["w_rest"], params["b_all"], params["wc"])


def ff_model_forward(params, rm_mat, pos_images, neg_images, neutral_sample,
                     class_labels, *, batch_size, input_dim,
                     peer_normalization=0.03, momentum=0.9, training=True):
    L, H = rm_mat.shape
    Bn = neutral_sample.shape[0]
    n_posneg = pos_images.shape[0] + neg_images.shape[0]
    k_pad = params["w0"].shape[0]
    C = params["wc"].shape[1]

    # Merged batch [pos | neg | neutral]: every layer runs exactly once per forward.
    z0 = jnp.concatenate(
        [pos_images.reshape(pos_images.shape[0], -1),
         neg_images.reshape(neg_images.shape[0], -1),
         neutral_sample.reshape(Bn, -1)], axis=0).astype(jnp.float32)
    z0 = jnp.pad(z0, ((0, 0), (0, k_pad - input_dim)))   # 784 -> 896 lane/K alignment

    stats = fused_ff_forward(z0, rm_mat, params, batch_size=batch_size,
                             n_posneg=n_posneg, n_neutral=Bn, input_dim=input_dim,
                             momentum=momentum)

    ff_losses = stats[0, :L]
    ff_accs = stats[1, :L]
    peer_losses = stats[2, :L]
    new_rm = stats[3:3 + L, :H]
    cls_logits = stats[3 + L:3 + L + Bn, :C]             # already max-subtracted

    scalar_outputs = {}
    total_loss = jnp.sum(ff_losses)
    if peer_normalization > 0:
        peer_total = jnp.sum(peer_losses)
        scalar_outputs["Peer Normalization"] = peer_total.reshape(1)
        total_loss = total_loss + peer_normalization * peer_total
        # Only commit the running-mean update in training mode (PyTorch parity).
        new_running_means = new_rm if training else rm_mat
    else:
        scalar_outputs["Peer Normalization"] = jnp.zeros((1,), jnp.float32)
        new_running_means = rm_mat

    for idx in range(L):
        scalar_outputs[f"loss_layer_{idx}"] = ff_losses[idx]
        scalar_outputs[f"ff_accuracy_layer_{idx}"] = ff_accs[idx]

    # Downstream classification loss / accuracy (tiny scalar glue, fused under jit).
    lse = jax.scipy.special.logsumexp(cls_logits, axis=-1)
    picked = jnp.take_along_axis(cls_logits, class_labels[:, None], axis=-1)[:, 0]
    classification_loss = jnp.mean(lse - picked)
    # TODO(synk): utils.get_accuracy is external; standard top-1 accuracy assumed.
    classification_accuracy = jnp.mean(
        (jnp.argmax(cls_logits, axis=-1) == class_labels).astype(jnp.float32))

    total_loss = total_loss + classification_loss
    scalar_outputs["Loss"] = total_loss.reshape(1)
    scalar_outputs["classification_loss"] = classification_loss
    scalar_outputs["classification_accuracy"] = classification_accuracy
    return scalar_outputs, new_running_means


# ----------------------------------------------------------------------------- init
def init_params(key, input_dim, hidden_dim, num_layers):
    """Matches FF_model._init_weights: W ~ N(0, 1/sqrt(out_features)), b = 0,
    classifier weight = 0, running means = 0.5."""
    layers = []
    dims = [input_dim] + [hidden_dim] * num_layers
    for i in range(num_layers):
        key, sub = jax.random.split(key)
        std = 1.0 / math.sqrt(hidden_dim)        # torch init: weight.shape[0] = out_features
        W = std * jax.random.normal(sub, (dims[i], dims[i + 1]), dtype=jnp.float32)
        b = jnp.zeros((dims[i + 1],), dtype=jnp.float32)
        layers.append((W, b))
    Wc = jnp.zeros((hidden_dim * (num_layers - 1), 10), dtype=jnp.float32)
    rm_mat = jnp.full((num_layers, hidden_dim), 0.5, dtype=jnp.float32)
    return layers, Wc, rm_mat


# ----------------------------------------------------------------------------- main
if __name__ == "__main__":
    BATCH = 4          # opt.input.batch_size
    HIDDEN = 32        # opt.model.hidden_dim
    NUM_LAYERS = 3     # opt.model.num_layers
    INPUT_DIM = 784    # nn.Linear(784, ...) -> 1x28x28 images

    key = jax.random.PRNGKey(0)
    k_params, k_pos, k_neg, k_neu, k_lab = jax.random.split(key, 5)

    layers, Wc, rm_mat = init_params(k_params, INPUT_DIM, HIDDEN, NUM_LAYERS)
    # Persistent consolidated bf16/f32 parameter copies — built once, not per step.
    params = pack_params(layers, Wc, input_dim=INPUT_DIM, mm_dtype=jnp.bfloat16)

    pos_images = jax.random.normal(k_pos, (BATCH, 1, 28, 28), dtype=jnp.float32)
    neg_images = jax.random.normal(k_neg, (BATCH, 1, 28, 28), dtype=jnp.float32)
    neutral_sample = jax.random.normal(k_neu, (BATCH, 1, 28, 28), dtype=jnp.float32)
    class_labels = jax.random.randint(k_lab, (BATCH,), 0, 10)

    fwd = jax.jit(functools.partial(
        ff_model_forward, batch_size=BATCH, input_dim=INPUT_DIM,
        peer_normalization=0.03, momentum=0.9, training=True))

    scalar_outputs, new_running_means = fwd(
        params, rm_mat, pos_images, neg_images, neutral_sample, class_labels)

    jax.block_until_ready((scalar_outputs, new_running_means))
    print("KERNEL_OK")
</pallas_src>

<mosaic_0001>
module attributes {stable_mosaic.version = 11 : i64} {
  func.func @_fused_ff_kernel(%arg0: memref<12x896xf32, #tpu.memory_space<vmem>>, %arg1: memref<3x32xf32, #tpu.memory_space<vmem>>, %arg2: memref<896x32xbf16, #tpu.memory_space<vmem>>, %arg3: memref<64x32xbf16, #tpu.memory_space<vmem>>, %arg4: memref<3x32xf32, #tpu.memory_space<vmem>>, %arg5: memref<64x10xbf16, #tpu.memory_space<vmem>>, %arg6: memref<16x128xf32, #tpu.memory_space<vmem>>) attributes {dimension_semantics = [], scalar_prefetch = 0 : i64, scratch_operands = 0 : i64, tpu.core_type = #tpu.core_type<tc>} {
    %0 = tpu.iota {dimensions = array<i32: 0>} : vector<12x1xi32>
    %1 = tpu.iota {dimensions = array<i32: 1>} : vector<1x12xi32>
    %c4_i32 = arith.constant 4 : i32
    %2 = vector.broadcast %c4_i32 : i32 to vector<12x1xi32>
    %3 = arith.cmpi slt, %0, %2 : vector<12x1xi32>
    %4 = arith.extui %3 : vector<12x1xi1> to vector<12x1xi32>
    %5 = arith.sitofp %4 : vector<12x1xi32> to vector<12x1xf32>
    %c8_i32 = arith.constant 8 : i32
    %6 = vector.broadcast %c8_i32 : i32 to vector<1x12xi32>
    %7 = arith.cmpi slt, %1, %6 : vector<1x12xi32>
    %cst = arith.constant 1.250000e-01 : f32
    %cst_0 = arith.constant 0.000000e+00 : f32
    %8 = vector.broadcast %cst : f32 to vector<1x12xf32>
    %9 = vector.broadcast %cst_0 : f32 to vector<1x12xf32>
    %10 = arith.select %7, %8, %9 : vector<1x12xi1>, vector<1x12xf32>
    %c4_i32_1 = arith.constant 4 : i32
    %11 = vector.broadcast %c4_i32_1 : i32 to vector<1x12xi32>
    %12 = arith.cmpi slt, %1, %11 : vector<1x12xi32>
    %cst_2 = arith.constant 2.500000e-01 : f32
    %cst_3 = arith.constant 0.000000e+00 : f32
    %13 = vector.broadcast %cst_2 : f32 to vector<1x12xf32>
    %14 = vector.broadcast %cst_3 : f32 to vector<1x12xf32>
    %15 = arith.select %12, %13, %14 : vector<1x12xi1>, vector<1x12xf32>
    %c0 = arith.constant 0 : index
    %c0_4 = arith.constant 0 : index
    %16 = vector.load %arg0[%c0, %c0_4] : memref<12x896xf32, #tpu.memory_space<vmem>>, vector<12x896xf32>
    %17 = arith.mulf %16, %16 : vector<12x896xf32>
    %cst_5 = arith.constant dense<0.000000e+00> : vector<12xf32>
    %18 = vector.multi_reduction <add>, %17, %cst_5 [1] : vector<12x896xf32> to vector<12xf32>
    %19 = vector.shape_cast %18 : vector<12xf32> to vector<12x1xf32>
    %cst_6 = arith.constant 0.00127551018 : f32
    %20 = vector.broadcast %cst_6 : f32 to vector<12x1xf32>
    %21 = arith.mulf %19, %20 : vector<12x1xf32>
    %22 = math.sqrt %21 : vector<12x1xf32>
    %cst_7 = arith.constant 9.99999993E-9 : f32
    %23 = vector.broadcast %cst_7 : f32 to vector<12x1xf32>
    %24 = arith.addf %22, %23 : vector<12x1xf32>
    %25 = vector.broadcast %24 : vector<12x1xf32> to vector<12x896xf32>
    %26 = arith.divf %16, %25 : vector<12x896xf32>
    %c0_8 = arith.constant 0 : index
    %c0_9 = arith.constant 0 : index
    %27 = vector.load %arg2[%c0_8, %c0_9] : memref<896x32xbf16, #tpu.memory_space<vmem>>, vector<896x32xbf16>
    %28 = arith.truncf %26 : vector<12x896xf32> to vector<12x896xbf16>
    %cst_10 = arith.constant dense<0.000000e+00> : vector<12x32xf32>
    %29 = tpu.matmul %28, %27, %cst_10 {dimension_numbers = #tpu.dot_dimension_numbers<[1], [0], [0], [1], [0, 0, 1, 1], [], []>} : vector<12x896xbf16>, vector<896x32xbf16>, vector<12x32xf32> -> vector<12x32xf32>
    %c0_11 = arith.constant 0 : index
    %c0_12 = arith.constant 0 : index
    %30 = vector.load %arg4[%c0_11, %c0_12] : memref<3x32xf32, #tpu.memory_space<vmem>>, vector<1x32xf32>
    %31 = vector.broadcast %30 : vector<1x32xf32> to vector<12x32xf32>
    %32 = arith.addf %29, %31 : vector<12x32xf32>
    %cst_13 = arith.constant 0.000000e+00 : f32
    %33 = vector.broadcast %cst_13 : f32 to vector<12x32xf32>
    %34 = arith.maximumf %32, %33 : vector<12x32xf32>
    %35 = arith.mulf %34, %34 : vector<12x32xf32>
    %cst_14 = arith.constant dense<0.000000e+00> : vector<12xf32>
    %36 = vector.multi_reduction <add>, %35, %cst_14 [1] : vector<12x32xf32> to vector<12xf32>
    %37 = vector.shape_cast %36 : vector<12xf32> to vector<12x1xf32>
    %cst_15 = arith.constant 3.200000e+01 : f32
    %38 = vector.broadcast %cst_15 : f32 to vector<12x1xf32>
    %39 = arith.subf %37, %38 : vector<12x1xf32>
    %cst_16 = arith.constant 0.000000e+00 : f32
    %40 = vector.broadcast %cst_16 : f32 to vector<12x1xf32>
    %41 = arith.maximumf %39, %40 : vector<12x1xf32>
    %42 = arith.mulf %39, %5 : vector<12x1xf32>
    %43 = arith.subf %41, %42 : vector<12x1xf32>
    %44 = math.absf %39 : vector<12x1xf32>
    %cst_17 = arith.constant 0.000000e+00 : f32
    %45 = vector.broadcast %cst_17 : f32 to vector<12x1xf32>
    %46 = arith.subf %45, %44 : vector<12x1xf32>
    %47 = math.exp %46 : vector<12x1xf32>
    %48 = math.log1p %47 : vector<12x1xf32>
    %49 = arith.addf %43, %48 : vector<12x1xf32>
    %cst_18 = arith.constant 0.000000e+00 : f32
    %50 = vector.broadcast %cst_18 : f32 to vector<12x1xf32>
    %51 = arith.cmpf ogt, %39, %50 : vector<12x1xf32>
    %cst_19 = arith.constant 5.000000e-01 : f32
    %52 = vector.broadcast %cst_19 : f32 to vector<12x1xf32>
    %53 = arith.cmpf ogt, %5, %52 : vector<12x1xf32>
    %54 = arith.xori %51, %53 : vector<12x1xi1>
    %cst_20 = arith.constant dense<true> : vector<12x1xi1>
    %55 = arith.xori %54, %cst_20 : vector<12x1xi1>
    %56 = arith.extui %55 : vector<12x1xi1> to vector<12x1xi32>
    %57 = arith.sitofp %56 : vector<12x1xi32> to vector<12x1xf32>
    %cst_21 = arith.constant dense<0.000000e+00> : vector<1x1xf32>
    %58 = tpu.matmul %10, %49, %cst_21 {dimension_numbers = #tpu.dot_dimension_numbers<[1], [0], [0], [1], [0, 0, 1, 1], [], []>} : vector<1x12xf32>, vector<12x1xf32>, vector<1x1xf32> -> vector<1x1xf32>
    %cst_22 = arith.constant dense<0.000000e+00> : vector<1x1xf32>
    %59 = tpu.matmul %10, %57, %cst_22 {dimension_numbers = #tpu.dot_dimension_numbers<[1], [0], [0], [1], [0, 0, 1, 1], [], []>} : vector<1x12xf32>, vector<12x1xf32>, vector<1x1xf32> -> vector<1x1xf32>
    %cst_23 = arith.constant dense<0.000000e+00> : vector<1x32xf32>
    %60 = tpu.matmul %15, %34, %cst_23 {dimension_numbers = #tpu.dot_dimension_numbers<[1], [0], [0], [1], [0, 0, 1, 1], [], []>} : vector<1x12xf32>, vector<12x32xf32>, vector<1x32xf32> -> vector<1x32xf32>
    %c0_24 = arith.constant 0 : index
    %c0_25 = arith.constant 0 : index
    %61 = vector.load %arg1[%c0_24, %c0_25] : memref<3x32xf32, #tpu.memory_space<vmem>>, vector<1x32xf32>
    %cst_26 = arith.constant 0.899999976 : f32
    %62 = vector.broadcast %cst_26 : f32 to vector<1x32xf32>
    %63 = arith.mulf %61, %62 : vector<1x32xf32>
    %cst_27 = arith.constant 1.000000e-01 : f32
    %64 = vector.broadcast %cst_27 : f32 to vector<1x32xf32>
    %65 = arith.mulf %60, %64 : vector<1x32xf32>
    %66 = arith.addf %63, %65 : vector<1x32xf32>
    %cst_28 = arith.constant dense<0.000000e+00> : vector<1xf32>
    %67 = vector.multi_reduction <add>, %66, %cst_28 [1] : vector<1x32xf32> to vector<1xf32>
    %68 = vector.shape_cast %67 : vector<1xf32> to vector<1x1xf32>
    %cst_29 = arith.constant 3.125000e-02 : f32
    %69 = vector.broadcast %cst_29 : f32 to vector<1x1xf32>
    %70 = arith.mulf %68, %69 : vector<1x1xf32>
    %71 = vector.broadcast %70 : vector<1x1xf32> to vector<1x32xf32>
    %72 = arith.subf %71, %66 : vector<1x32xf32>
    %73 = arith.mulf %72, %72 : vector<1x32xf32>
    %cst_30 = arith.constant dense<0.000000e+00> : vector<1xf32>
    %74 = vector.multi_reduction <add>, %73, %cst_30 [1] : vector<1x32xf32> to vector<1xf32>
    %75 = vector.shape_cast %74 : vector<1xf32> to vector<1x1xf32>
    %cst_31 = arith.constant 3.125000e-02 : f32
    %76 = vector.broadcast %cst_31 : f32 to vector<1x1xf32>
    %77 = arith.mulf %75, %76 : vector<1x1xf32>
    %cst_32 = arith.constant 3.125000e-02 : f32
    %78 = vector.broadcast %cst_32 : f32 to vector<12x1xf32>
    %79 = arith.mulf %37, %78 : vector<12x1xf32>
    %80 = math.sqrt %79 : vector<12x1xf32>
    %cst_33 = arith.constant 9.99999993E-9 : f32
    %81 = vector.broadcast %cst_33 : f32 to vector<12x1xf32>
    %82 = arith.addf %80, %81 : vector<12x1xf32>
    %83 = vector.broadcast %82 : vector<12x1xf32> to vector<12x32xf32>
    %84 = arith.divf %34, %83 : vector<12x32xf32>
    %c0_34 = arith.constant 0 : index
    %c0_35 = arith.constant 0 : index
    %85 = vector.load %arg3[%c0_34, %c0_35] : memref<64x32xbf16, #tpu.memory_space<vmem>>, vector<32x32xbf16>
    %86 = arith.truncf %84 : vector<12x32xf32> to vector<12x32xbf16>
    %cst_36 = arith.constant dense<0.000000e+00> : vector<12x32xf32>
    %87 = tpu.matmul %86, %85, %cst_36 {dimension_numbers = #tpu.dot_dimension_numbers<[1], [0], [0], [1], [0, 0, 1, 1], [], []>} : vector<12x32xbf16>, vector<32x32xbf16>, vector<12x32xf32> -> vector<12x32xf32>
    %c1 = arith.constant 1 : index
    %c0_37 = arith.constant 0 : index
    %88 = vector.load %arg4[%c1, %c0_37] : memref<3x32xf32, #tpu.memory_space<vmem>>, vector<1x32xf32>
    %89 = vector.broadcast %88 : vector<1x32xf32> to vector<12x32xf32>
    %90 = arith.addf %87, %89 : vector<12x32xf32>
    %cst_38 = arith.constant 0.000000e+00 : f32
    %91 = vector.broadcast %cst_38 : f32 to vector<12x32xf32>
    %92 = arith.maximumf %90, %91 : vector<12x32xf32>
    %93 = arith.mulf %92, %92 : vector<12x32xf32>
    %cst_39 = arith.constant dense<0.000000e+00> : vector<12xf32>
    %94 = vector.multi_reduction <add>, %93, %cst_39 [1] : vector<12x32xf32> to vector<12xf32>
    %95 = vector.shape_cast %94 : vector<12xf32> to vector<12x1xf32>
    %cst_40 = arith.constant 3.200000e+01 : f32
    %96 = vector.broadcast %cst_40 : f32 to vector<12x1xf32>
    %97 = arith.subf %95, %96 : vector<12x1xf32>
    %cst_41 = arith.constant 0.000000e+00 : f32
    %98 = vector.broadcast %cst_41 : f32 to vector<12x1xf32>
    %99 = arith.maximumf %97, %98 : vector<12x1xf32>
    %100 = arith.mulf %97, %5 : vector<12x1xf32>
    %101 = arith.subf %99, %100 : vector<12x1xf32>
    %102 = math.absf %97 : vector<12x1xf32>
    %cst_42 = arith.constant 0.000000e+00 : f32
    %103 = vector.broadcast %cst_42 : f32 to vector<12x1xf32>
    %104 = arith.subf %103, %102 : vector<12x1xf32>
    %105 = math.exp %104 : vector<12x1xf32>
    %106 = math.log1p %105 : vector<12x1xf32>
    %107 = arith.addf %101, %106 : vector<12x1xf32>
    %cst_43 = arith.constant 0.000000e+00 : f32
    %108 = vector.broadcast %cst_43 : f32 to vector<12x1xf32>
    %109 = arith.cmpf ogt, %97, %108 : vector<12x1xf32>
    %cst_44 = arith.constant 5.000000e-01 : f32
    %110 = vector.broadcast %cst_44 : f32 to vector<12x1xf32>
    %111 = arith.cmpf ogt, %5, %110 : vector<12x1xf32>
    %112 = arith.xori %109, %111 : vector<12x1xi1>
    %cst_45 = arith.constant dense<true> : vector<12x1xi1>
    %113 = arith.xori %112, %cst_45 : vector<12x1xi1>
    %114 = arith.extui %113 : vector<12x1xi1> to vector<12x1xi32>
    %115 = arith.sitofp %114 : vector<12x1xi32> to vector<12x1xf32>
    %cst_46 = arith.constant dense<0.000000e+00> : vector<1x1xf32>
    %116 = tpu.matmul %10, %107, %cst_46 {dimension_numbers = #tpu.dot_dimension_numbers<[1], [0], [0], [1], [0, 0, 1, 1], [], []>} : vector<1x12xf32>, vector<12x1xf32>, vector<1x1xf32> -> vector<1x1xf32>
    %cst_47 = arith.constant dense<0.000000e+00> : vector<1x1xf32>
    %117 = tpu.matmul %10, %115, %cst_47 {dimension_numbers = #tpu.dot_dimension_numbers<[1], [0], [0], [1], [0, 0, 1, 1], [], []>} : vector<1x12xf32>, vector<12x1xf32>, vector<1x1xf32> -> vector<1x1xf32>
    %cst_48 = arith.constant dense<0.000000e+00> : vector<1x32xf32>
    %118 = tpu.matmul %15, %92, %cst_48 {dimension_numbers = #tpu.dot_dimension_numbers<[1], [0], [0], [1], [0, 0, 1, 1], [], []>} : vector<1x12xf32>, vector<12x32xf32>, vector<1x32xf32> -> vector<1x32xf32>
    %c1_49 = arith.constant 1 : index
    %c0_50 = arith.constant 0 : index
    %119 = vector.load %arg1[%c1_49, %c0_50] : memref<3x32xf32, #tpu.memory_space<vmem>>, vector<1x32xf32>
    %cst_51 = arith.constant 0.899999976 : f32
    %120 = vector.broadcast %cst_51 : f32 to vector<1x32xf32>
    %121 = arith.mulf %119, %120 : vector<1x32xf32>
    %cst_52 = arith.constant 1.000000e-01 : f32
    %122 = vector.broadcast %cst_52 : f32 to vector<1x32xf32>
    %123 = arith.mulf %118, %122 : vector<1x32xf32>
    %124 = arith.addf %121, %123 : vector<1x32xf32>
    %cst_53 = arith.constant dense<0.000000e+00> : vector<1xf32>
    %125 = vector.multi_reduction <add>, %124, %cst_53 [1] : vector<1x32xf32> to vector<1xf32>
    %126 = vector.shape_cast %125 : vector<1xf32> to vector<1x1xf32>
    %cst_54 = arith.constant 3.125000e-02 : f32
    %127 = vector.broadcast %cst_54 : f32 to vector<1x1xf32>
    %128 = arith.mulf %126, %127 : vector<1x1xf32>
    %129 = vector.broadcast %128 : vector<1x1xf32> to vector<1x32xf32>
    %130 = arith.subf %129, %124 : vector<1x32xf32>
    %131 = arith.mulf %130, %130 : vector<1x32xf32>
    %cst_55 = arith.constant dense<0.000000e+00> : vector<1xf32>
    %132 = vector.multi_reduction <add>, %131, %cst_55 [1] : vector<1x32xf32> to vector<1xf32>
    %133 = vector.shape_cast %132 : vector<1xf32> to vector<1x1xf32>
    %cst_56 = arith.constant 3.125000e-02 : f32
    %134 = vector.broadcast %cst_56 : f32 to vector<1x1xf32>
    %135 = arith.mulf %133, %134 : vector<1x1xf32>
    %cst_57 = arith.constant 3.125000e-02 : f32
    %136 = vector.broadcast %cst_57 : f32 to vector<12x1xf32>
    %137 = arith.mulf %95, %136 : vector<12x1xf32>
    %138 = math.sqrt %137 : vector<12x1xf32>
    %cst_58 = arith.constant 9.99999993E-9 : f32
    %139 = vector.broadcast %cst_58 : f32 to vector<12x1xf32>
    %140 = arith.addf %138, %139 : vector<12x1xf32>
    %141 = vector.broadcast %140 : vector<12x1xf32> to vector<12x32xf32>
    %142 = arith.divf %92, %141 : vector<12x32xf32>
    %143 = vector.extract_strided_slice %142 {offsets = [8, 0], sizes = [4, 32], strides = [1, 1]} : vector<12x32xf32> to vector<4x32xf32>
    %144 = arith.truncf %143 : vector<4x32xf32> to vector<4x32xbf16>
    %c0_59 = arith.constant 0 : index
    %c0_60 = arith.constant 0 : index
    %145 = vector.load %arg5[%c0_59, %c0_60] : memref<64x10xbf16, #tpu.memory_space<vmem>>, vector<32x10xbf16>
    %cst_61 = arith.constant dense<0.000000e+00> : vector<4x10xf32>
    %146 = tpu.matmul %144, %145, %cst_61 {dimension_numbers = #tpu.dot_dimension_numbers<[1], [0], [0], [1], [0, 0, 1, 1], [], []>} : vector<4x32xbf16>, vector<32x10xbf16>, vector<4x10xf32> -> vector<4x10xf32>
    %c32 = arith.constant 32 : index
    %c0_62 = arith.constant 0 : index
    %147 = vector.load %arg3[%c32, %c0_62] : memref<64x32xbf16, #tpu.memory_space<vmem>>, vector<32x32xbf16>
    %148 = arith.truncf %142 : vector<12x32xf32> to vector<12x32xbf16>
    %cst_63 = arith.constant dense<0.000000e+00> : vector<12x32xf32>
    %149 = tpu.matmul %148, %147, %cst_63 {dimension_numbers = #tpu.dot_dimension_numbers<[1], [0], [0], [1], [0, 0, 1, 1], [], []>} : vector<12x32xbf16>, vector<32x32xbf16>, vector<12x32xf32> -> vector<12x32xf32>
    %c2 = arith.constant 2 : index
    %c0_64 = arith.constant 0 : index
    %150 = vector.load %arg4[%c2, %c0_64] : memref<3x32xf32, #tpu.memory_space<vmem>>, vector<1x32xf32>
    %151 = vector.broadcast %150 : vector<1x32xf32> to vector<12x32xf32>
    %152 = arith.addf %149, %151 : vector<12x32xf32>
    %cst_65 = arith.constant 0.000000e+00 : f32
    %153 = vector.broadcast %cst_65 : f32 to vector<12x32xf32>
    %154 = arith.maximumf %152, %153 : vector<12x32xf32>
    %155 = arith.mulf %154, %154 : vector<12x32xf32>
    %cst_66 = arith.constant dense<0.000000e+00> : vector<12xf32>
    %156 = vector.multi_reduction <add>, %155, %cst_66 [1] : vector<12x32xf32> to vector<12xf32>
    %157 = vector.shape_cast %156 : vector<12xf32> to vector<12x1xf32>
    %cst_67 = arith.constant 3.200000e+01 : f32
    %158 = vector.broadcast %cst_67 : f32 to vector<12x1xf32>
    %159 = arith.subf %157, %158 : vector<12x1xf32>
    %cst_68 = arith.constant 0.000000e+00 : f32
    %160 = vector.broadcast %cst_68 : f32 to vector<12x1xf32>
    %161 = arith.maximumf %159, %160 : vector<12x1xf32>
    %162 = arith.mulf %159, %5 : vector<12x1xf32>
    %163 = arith.subf %161, %162 : vector<12x1xf32>
    %164 = math.absf %159 : vector<12x1xf32>
    %cst_69 = arith.constant 0.000000e+00 : f32
    %165 = vector.broadcast %cst_69 : f32 to vector<12x1xf32>
    %166 = arith.subf %165, %164 : vector<12x1xf32>
    %167 = math.exp %166 : vector<12x1xf32>
    %168 = math.log1p %167 : vector<12x1xf32>
    %169 = arith.addf %163, %168 : vector<12x1xf32>
    %cst_70 = arith.constant 0.000000e+00 : f32
    %170 = vector.broadcast %cst_70 : f32 to vector<12x1xf32>
    %171 = arith.cmpf ogt, %159, %170 : vector<12x1xf32>
    %cst_71 = arith.constant 5.000000e-01 : f32
    %172 = vector.broadcast %cst_71 : f32 to vector<12x1xf32>
    %173 = arith.cmpf ogt, %5, %172 : vector<12x1xf32>
    %174 = arith.xori %171, %173 : vector<12x1xi1>
    %cst_72 = arith.constant dense<true> : vector<12x1xi1>
    %175 = arith.xori %174, %cst_72 : vector<12x1xi1>
    %176 = arith.extui %175 : vector<12x1xi1> to vector<12x1xi32>
    %177 = arith.sitofp %176 : vector<12x1xi32> to vector<12x1xf32>
    %cst_73 = arith.constant dense<0.000000e+00> : vector<1x1xf32>
    %178 = tpu.matmul %10, %169, %cst_73 {dimension_numbers = #tpu.dot_dimension_numbers<[1], [0], [0], [1], [0, 0, 1, 1], [], []>} : vector<1x12xf32>, vector<12x1xf32>, vector<1x1xf32> -> vector<1x1xf32>
    %cst_74 = arith.constant dense<0.000000e+00> : vector<1x1xf32>
    %179 = tpu.matmul %10, %177, %cst_74 {dimension_numbers = #tpu.dot_dimension_numbers<[1], [0], [0], [1], [0, 0, 1, 1], [], []>} : vector<1x12xf32>, vector<12x1xf32>, vector<1x1xf32> -> vector<1x1xf32>
    %cst_75 = arith.constant dense<0.000000e+00> : vector<1x32xf32>
    %180 = tpu.matmul %15, %154, %cst_75 {dimension_numbers = #tpu.dot_dimension_numbers<[1], [0], [0], [1], [0, 0, 1, 1], [], []>} : vector<1x12xf32>, vector<12x32xf32>, vector<1x32xf32> -> vector<1x32xf32>
    %c2_76 = arith.constant 2 : index
    %c0_77 = arith.constant 0 : index
    %181 = vector.load %arg1[%c2_76, %c0_77] : memref<3x32xf32, #tpu.memory_space<vmem>>, vector<1x32xf32>
    %cst_78 = arith.constant 0.899999976 : f32
    %182 = vector.broadcast %cst_78 : f32 to vector<1x32xf32>
    %183 = arith.mulf %181, %182 : vector<1x32xf32>
    %cst_79 = arith.constant 1.000000e-01 : f32
    %184 = vector.broadcast %cst_79 : f32 to vector<1x32xf32>
    %185 = arith.mulf %180, %184 : vector<1x32xf32>
    %186 = arith.addf %183, %185 : vector<1x32xf32>
    %cst_80 = arith.constant dense<0.000000e+00> : vector<1xf32>
    %187 = vector.multi_reduction <add>, %186, %cst_80 [1] : vector<1x32xf32> to vector<1xf32>
    %188 = vector.shape_cast %187 : vector<1xf32> to vector<1x1xf32>
    %cst_81 = arith.constant 3.125000e-02 : f32
    %189 = vector.broadcast %cst_81 : f32 to vector<1x1xf32>
    %190 = arith.mulf %188, %189 : vector<1x1xf32>
    %191 = vector.broadcast %190 : vector<1x1xf32> to vector<1x32xf32>
    %192 = arith.subf %191, %186 : vector<1x32xf32>
    %193 = arith.mulf %192, %192 : vector<1x32xf32>
    %cst_82 = arith.constant dense<0.000000e+00> : vector<1xf32>
    %194 = vector.multi_reduction <add>, %193, %cst_82 [1] : vector<1x32xf32> to vector<1xf32>
    %195 = vector.shape_cast %194 : vector<1xf32> to vector<1x1xf32>
    %cst_83 = arith.constant 3.125000e-02 : f32
    %196 = vector.broadcast %cst_83 : f32 to vector<1x1xf32>
    %197 = arith.mulf %195, %196 : vector<1x1xf32>
    %cst_84 = arith.constant 3.125000e-02 : f32
    %198 = vector.broadcast %cst_84 : f32 to vector<12x1xf32>
    %199 = arith.mulf %157, %198 : vector<12x1xf32>
    %200 = math.sqrt %199 : vector<12x1xf32>
    %cst_85 = arith.constant 9.99999993E-9 : f32
    %201 = vector.broadcast %cst_85 : f32 to vector<12x1xf32>
    %202 = arith.addf %200, %201 : vector<12x1xf32>
    %203 = vector.broadcast %202 : vector<12x1xf32> to vector<12x32xf32>
    %204 = arith.divf %154, %203 : vector<12x32xf32>
    %205 = vector.extract_strided_slice %204 {offsets = [8, 0], sizes = [4, 32], strides = [1, 1]} : vector<12x32xf32> to vector<4x32xf32>
    %206 = arith.truncf %205 : vector<4x32xf32> to vector<4x32xbf16>
    %c32_86 = arith.constant 32 : index
    %c0_87 = arith.constant 0 : index
    %207 = vector.load %arg5[%c32_86, %c0_87] : memref<64x10xbf16, #tpu.memory_space<vmem>>, vector<32x10xbf16>
    %cst_88 = arith.constant dense<0.000000e+00> : vector<4x10xf32>
    %208 = tpu.matmul %206, %207, %cst_88 {dimension_numbers = #tpu.dot_dimension_numbers<[1], [0], [0], [1], [0, 0, 1, 1], [], []>} : vector<4x32xbf16>, vector<32x10xbf16>, vector<4x10xf32> -> vector<4x10xf32>
    %209 = arith.addf %146, %208 : vector<4x10xf32>
    %210 = tpu.concatenate %58, %116, %178 in 1 : vector<1x1xf32>, vector<1x1xf32>, vector<1x1xf32> -> vector<1x3xf32>
    %211 = tpu.concatenate %59, %117, %179 in 1 : vector<1x1xf32>, vector<1x1xf32>, vector<1x1xf32> -> vector<1x3xf32>
    %212 = tpu.concatenate %77, %135, %197 in 1 : vector<1x1xf32>, vector<1x1xf32>, vector<1x1xf32> -> vector<1x3xf32>
    %213 = tpu.concatenate %210, %211, %212 in 0 : vector<1x3xf32>, vector<1x3xf32>, vector<1x3xf32> -> vector<3x3xf32>
    %c0_89 = arith.constant 0 : index
    %c0_90 = arith.constant 0 : index
    %214 = vector.load %arg6[%c0_89, %c0_90] : memref<16x128xf32, #tpu.memory_space<vmem>>, vector<3x3xf32>
    tpu.vector_store %arg6[%c0_89, %c0_90], %213 {strides = array<i32>} : memref<16x128xf32, #tpu.memory_space<vmem>>, vector<3x3xf32>,
    %215 = tpu.concatenate %66, %124, %186 in 0 : vector<1x32xf32>, vector<1x32xf32>, vector<1x32xf32> -> vector<3x32xf32>
    %c3 = arith.constant 3 : index
    %c0_91 = arith.constant 0 : index
    %216 = vector.load %arg6[%c3, %c0_91] : memref<16x128xf32, #tpu.memory_space<vmem>>, vector<3x32xf32>
    tpu.vector_store %arg6[%c3, %c0_91], %215 {strides = array<i32>} : memref<16x128xf32, #tpu.memory_space<vmem>>, vector<3x32xf32>,
    %cst_92 = arith.constant dense<0xFF800000> : vector<4xf32>
    %217 = vector.multi_reduction <maximumf>, %209, %cst_92 [1] : vector<4x10xf32> to vector<4xf32>
    %218 = vector.shape_cast %217 : vector<4xf32> to vector<4x1xf32>
    %219 = vector.broadcast %218 : vector<4x1xf32> to vector<4x10xf32>
    %220 = arith.subf %209, %219 : vector<4x10xf32>
    %c6 = arith.constant 6 : index
    %c0_93 = arith.constant 0 : index
    %221 = vector.load %arg6[%c6, %c0_93] : memref<16x128xf32, #tpu.memory_space<vmem>>, vector<4x10xf32>
    tpu.vector_store %arg6[%c6, %c0_93], %220 {strides = array<i32>} : memref<16x128xf32, #tpu.memory_space<vmem>>, vector<4x10xf32>,
    return
  }
}

</mosaic_0001>

<bundles_post_ra>
// kernel: ff_model_forward.1
= control target key start
LH: loop header
LB: loop body
LE: loop exit
PB: predicated region body
PF: predicated region fallthrough
CT: control target
= control target key end

     0   :  { %vm75_vm0 = vcmask 1043456   ;;  %vm724_vm13 = vcmask 257024   ;;  %vm720_vm14 = vcmask 261120   ;;  %s2502_s0 = inlined_call_operand.vmem [shape: f32[12,896], index: 0, kind: input, shape index: {}]   ;;  %s2503_s4 = inlined_call_operand.vmem [shape: f32[3,32], index: 4, kind: input, shape index: {}]   ;;  %s2504_s2 = inlined_call_operand.vmem [shape: bf16[896,32], index: 2, kind: input, shape index: {}]   ;;  %s2505_s3 = inlined_call_operand.vmem [shape: bf16[64,32], index: 3, kind: input, shape index: {}]   ;;  %s2506_s1 = inlined_call_operand.vmem [shape: f32[3,32], index: 1, kind: input, shape index: {}]   ;;  %s2507_s5 = inlined_call_operand.vmem [shape: bf16[64,10], index: 5, kind: input, shape index: {}]   ;;  %s2508_s6 = inlined_call_operand.vmem [shape: f32[16,128], index: 6, kind: output, shape index: {}]  }
   0x1   :  { %v1945_v0 = vld [vmem:[%s2502_s0] sm:$0xff]  ;;  %v1950_v1 = vld [vmem:[%s2502_s0 + $0x8] sm:$0xff]  ;;  %v1955_v2 = vld [vmem:[%s2502_s0 + $0x10] sm:$0xff] }
   0x2   :  { %v1960_v3 = vld [vmem:[%s2502_s0 + $0x18] sm:$0xff]  ;;  %v53_v4 = vmul.f32 %v1945_v0, %v1945_v0  ;;  %v54_v5 = vmul.f32 %v1950_v1, %v1950_v1  ;;  %v55_v6 = vmul.f32 %v1955_v2, %v1955_v2  ;;  %v1971_v7 = vld [vmem:[%s2502_s0 + $0x20] sm:$0xff]  ;;  %v1988_v12 = vld [vmem:[%s2502_s0 + $0x48] sm:$0xf] }
   0x3   :  { %v1976_v8 = vld [vmem:[%s2502_s0 + $0x38] sm:$0xf]  ;;  %v1981_v9 = vld [vmem:[%s2502_s0 + $0x40] sm:$0xf]  ;;  %v56_v10 = vmul.f32 %v1960_v3, %v1960_v3  ;;  %v1993_v13 = vld [vmem:[%s2502_s0 + $0x50] sm:$0xf]  ;;  %v62_v18 = vmul.f32 %v1988_v12, %v1988_v12  ;;  %v57_v20 = vmul.f32 %v1971_v7, %v1971_v7 }
   0x4   :  { %v67_v11 = vadd.f32 %v54_v5, %v53_v4  ;;  %v1998_v14 = vld [vmem:[%s2502_s0 + $0x58] sm:$0xf]  ;;  %v60_v15 = vmul.f32 %v1976_v8, %v1976_v8  ;;  %v61_v16 = vmul.f32 %v1981_v9, %v1981_v9  ;;  %v2007_v17 = vld [vmem:[%s2502_s0 + $0x28] sm:$0xff]  ;;  %v63_v19 = vmul.f32 %v1993_v13, %v1993_v13  ;;  %v2018_v22 = vld [vmem:[%s2502_s0 + $0x60] sm:$0xf] }
   0x5   :  { %v2024_v24 = vld [vmem:[%s2502_s0 + $0x30] sm:$0xff]  ;;  %v64_v25 = vmul.f32 %v1998_v14, %v1998_v14  ;;  %v79_v27 = vsel %vm75_vm0, %v62_v18, 0.0  ;;  %v58_v28 = vmul.f32 %v2007_v17, %v2007_v17  ;;  %v65_v31 = vmul.f32 %v2018_v22, %v2018_v22  ;;  %v2040_v35 = vld [vmem:[%s2502_s0 + $0x68] sm:$0xf]  ;;  %v1785_v47 = vld [vmem:[%s2504_s2 + $0x38] sm:$0xff] }
   0x6   :  { %v68_v21 = vadd.f32 %v67_v11, %v55_v6  ;;  %v76_v23 = vsel %vm75_vm0, %v60_v15, 0.0  ;;  %v77_v26 = vsel %vm75_vm0, %v61_v16, 0.0  ;;  %v81_v32 = vsel %vm75_vm0, %v63_v19, 0.0  ;;  %v1793_v48 = vld [vmem:[%s2504_s2 + $0x78] sm:$0xff]  ;;  %618 = vmatpush.bf16.msra.mxu0 %v1785_v47  ;;  %v1784_v50 = vld [vmem:[%s2504_s2 + $0x30] sm:$0xff]  ;;  %v1783_v53 = vld [vmem:[%s2504_s2 + $0x28] sm:$0xff] }
   0x7   :  { %v78_v30 = vadd.f32 %v77_v26, %v76_v23  ;;  %v59_v33 = vmul.f32 %v2024_v24, %v2024_v24  ;;  %v83_v37 = vsel %vm75_vm0, %v64_v25, 0.0  ;;  %v66_v40 = vmul.f32 %v2040_v35, %v2040_v35  ;;  %v1801_v49 = vld [vmem:[%s2504_s2 + $0xb8] sm:$0xff]  ;;  %632 = vmatpush.bf16.msra.mxu1 %v1793_v48  ;;  %v1792_v51 = vld [vmem:[%s2504_s2 + $0x70] sm:$0xff]  ;;  %v1791_v54 = vld [vmem:[%s2504_s2 + $0x68] sm:$0xff] }
   0x8   :  { %v69_v29 = vadd.f32 %v68_v21, %v56_v10  ;;  %v85_v41 = vsel %vm75_vm0, %v65_v31, 0.0  ;;  %646 = vmatpush.bf16.msra.mxu2 %v1801_v49  ;;  %v1800_v52 = vld [vmem:[%s2504_s2 + $0xb0] sm:$0xff]  ;;  %v1799_v55 = vld [vmem:[%s2504_s2 + $0xa8] sm:$0xff]  ;;  %v1782_v56 = vld [vmem:[%s2504_s2 + $0x20] sm:$0xff] }
   0x9   :  { %v80_v36 = vadd.f32 %v79_v27, %v78_v30  ;;  %v87_v45 = vsel %vm75_vm0, %v66_v40, 0.0  ;;  %v1790_v57 = vld [vmem:[%s2504_s2 + $0x60] sm:$0xff]  ;;  %v1809_v59 = vld [vmem:[%s2504_s2 + $0xf8] sm:$0xff]  ;;  %v1808_v63 = vld [vmem:[%s2504_s2 + $0xf0] sm:$0xff] }
   0xa   :  { %v70_v34 = vadd.f32 %v69_v29, %v57_v20  ;;  %619 = vmatpush.bf16.msra.mxu0 %v1784_v50  ;;  %v1798_v58 = vld [vmem:[%s2504_s2 + $0xa0] sm:$0xff]  ;;  %660 = vmatpush.bf16.msra.mxu3 %v1809_v59  ;;  %v1781_v60 = vld [vmem:[%s2504_s2 + $0x18] sm:$0xff]  ;;  %v1780_v4 = vld [vmem:[%s2504_s2 + $0x10] sm:$0xff] }
   0xb   :  { %v82_v39 = vadd.f32 %v81_v32, %v80_v36  ;;  %633 = vmatpush.bf16.msra.mxu1 %v1792_v51  ;;  %v1789_v61 = vld [vmem:[%s2504_s2 + $0x58] sm:$0xff]  ;;  %v1788_v5 = vld [vmem:[%s2504_s2 + $0x50] sm:$0xff]  ;;  %v1807_v10 = vld [vmem:[%s2504_s2 + $0xe8] sm:$0xff] }
   0xc   :  { %v71_v38 = vadd.f32 %v70_v34, %v58_v28  ;;  %647 = vmatpush.bf16.msra.mxu2 %v1800_v52  ;;  %v1797_v62 = vld [vmem:[%s2504_s2 + $0x98] sm:$0xff]  ;;  %v1796_v6 = vld [vmem:[%s2504_s2 + $0x90] sm:$0xff]  ;;  %v1779_v16 = vld [vmem:[%s2504_s2 + $0x8] sm:$0xff] }
   0xd   :  { %v84_v43 = vadd.f32 %v83_v37, %v82_v39  ;;  %v1787_v18 = vld [vmem:[%s2504_s2 + $0x48] sm:$0xff]  ;;  %v1806_v20 = vld [vmem:[%s2504_s2 + $0xe0] sm:$0xff]  ;;  %v1805_v26 = vld [vmem:[%s2504_s2 + $0xd8] sm:$0xff] }
   0xe   :  { %v72_v42 = vadd.f32 %v71_v38, %v59_v33  ;;  %620 = vmatpush.bf16.msra.mxu0 %v1783_v53  ;;  %661 = vmatpush.bf16.msra.mxu3 %v1808_v63  ;;  %v1795_v19 = vld [vmem:[%s2504_s2 + $0x88] sm:$0xff]  ;;  %v1778_v21 = vld [vmem:[%s2504_s2] sm:$0xff]  ;;  %v1817_v27 = vld [vmem:[%s2504_s2 + $0x138] sm:$0xff] }
   0xf   :  { %v86_v44 = vadd.f32 %v85_v41, %v84_v43  ;;  %634 = vmatpush.bf16.msra.mxu1 %v1791_v54  ;;  %v1786_v23 = vld [vmem:[%s2504_s2 + $0x40] sm:$0xff]  ;;  %v1825_v28 = vld [vmem:[%s2504_s2 + $0x178] sm:$0xff]  ;;  %v1804_v31 = vld [vmem:[%s2504_s2 + $0xd0] sm:$0xff] }
  0x10   :  { %73 = vadd.xlane.f32.xlu0 %v72_v42  ;;  %648 = vmatpush.bf16.msra.mxu2 %v1799_v55  ;;  %v1794_v25 = vld [vmem:[%s2504_s2 + $0x80] sm:$0xff]  ;;  %v1833_v29 = vld [vmem:[%s2504_s2 + $0x1b8] sm:$0xff]  ;;  %v1816_v34 = vld [vmem:[%s2504_s2 + $0x130] sm:$0xff] }
  0x11   :  { %v88_v46 = vadd.f32 %v87_v45, %v86_v44  ;;  %v1824_v36 = vld [vmem:[%s2504_s2 + $0x170] sm:$0xff]  ;;  %v1803_v40 = vld [vmem:[%s2504_s2 + $0xc8] sm:$0xff]  ;;  %v1814_v48 = vld [vmem:[%s2504_s2 + $0x120] sm:$0xff] }
  0x12   :  { %621 = vmatpush.bf16.msra.mxu0 %v1782_v56  ;;  %662 = vmatpush.bf16.msra.mxu3 %v1807_v10  ;;  %v1832_v38 = vld [vmem:[%s2504_s2 + $0x1b0] sm:$0xff]  ;;  %v1815_v41 = vld [vmem:[%s2504_s2 + $0x128] sm:$0xff]  ;;  %v1822_v49 = vld [vmem:[%s2504_s2 + $0x160] sm:$0xff] }
  0x13   :  { %635 = vmatpush.bf16.msra.mxu1 %v1790_v57  ;;  %v1823_v42 = vld [vmem:[%s2504_s2 + $0x168] sm:$0xff]  ;;  %v1830_v52 = vld [vmem:[%s2504_s2 + $0x1a0] sm:$0xff]  ;;  %v1813_v59 = vld [vmem:[%s2504_s2 + $0x118] sm:$0xff] }
  0x14   :  { %649 = vmatpush.bf16.msra.mxu2 %v1798_v58  ;;  %v1831_v44 = vld [vmem:[%s2504_s2 + $0x1a8] sm:$0xff]  ;;  %v1828_v10 = vld [vmem:[%s2504_s2 + $0x190] sm:$0xff] }
  0x16   :  { %622 = vmatpush.bf16.msra.mxu0 %v1781_v60  ;;  %663 = vmatpush.bf16.msra.mxu3 %v1806_v20  ;;  %v1821_v60 = vld [vmem:[%s2504_s2 + $0x158] sm:$0xff]  ;;  %v1827_v20 = vld [vmem:[%s2504_s2 + $0x188] sm:$0xff] }
  0x17   :  { %636 = vmatpush.bf16.msra.mxu1 %v1789_v61  ;;  %v1829_v61 = vld [vmem:[%s2504_s2 + $0x198] sm:$0xff] }
  0x18   :  { %89 = vadd.xlane.f32.xlu0 %v88_v46  ;;  %650 = vmatpush.bf16.msra.mxu2 %v1797_v62  ;;  %v1802_v46 = vld [vmem:[%s2504_s2 + $0xc0] sm:$0xff] }
  0x1a   :  { %623 = vmatpush.bf16.msra.mxu0 %v1780_v4  ;;  %664 = vmatpush.bf16.msra.mxu3 %v1805_v26  ;;  %v1812_v4 = vld [vmem:[%s2504_s2 + $0x110] sm:$0xff] }
  0x1b   :  { %637 = vmatpush.bf16.msra.mxu1 %v1788_v5  ;;  %v1820_v5 = vld [vmem:[%s2504_s2 + $0x150] sm:$0xff] }
  0x1c   :  { %651 = vmatpush.bf16.msra.mxu2 %v1796_v6 }
  0x1e   :  { %624 = vmatpush.bf16.msra.mxu0 %v1779_v16  ;;  %665 = vmatpush.bf16.msra.mxu3 %v1804_v31  ;;  %v1811_v16 = vld [vmem:[%s2504_s2 + $0x108] sm:$0xff] }
  0x1f   :  { %638 = vmatpush.bf16.msra.mxu1 %v1787_v18  ;;  %v1819_v18 = vld [vmem:[%s2504_s2 + $0x148] sm:$0xff] }
  0x20   :  { %652 = vmatpush.bf16.msra.mxu2 %v1795_v19 }
  0x22   :  { %625 = vmatpush.bf16.msra.mxu0 %v1778_v21  ;;  %666 = vmatpush.bf16.msra.mxu3 %v1803_v40 }
  0x23   :  { %639 = vmatpush.bf16.msra.mxu1 %v1786_v23 }
  0x24   :  { %653 = vmatpush.bf16.msra.mxu2 %v1794_v25 }
  0x26   :  { %674 = vmatpush.bf16.msrb.mxu0 %v1817_v27  ;;  %667 = vmatpush.bf16.msra.mxu3 %v1802_v46  ;;  %v1810_v27 = vld [vmem:[%s2504_s2 + $0x100] sm:$0xff] }
  0x27   :  { %688 = vmatpush.bf16.msrb.mxu1 %v1825_v28  ;;  %v1818_v28 = vld [vmem:[%s2504_s2 + $0x140] sm:$0xff] }
  0x28   :  { %702 = vmatpush.bf16.msrb.mxu2 %v1833_v29  ;;  %v1826_v29 = vld [vmem:[%s2504_s2 + $0x180] sm:$0xff] }
  0x2a   :  { %675 = vmatpush.bf16.msrb.mxu0 %v1816_v34 }
  0x2b   :  { %689 = vmatpush.bf16.msrb.mxu1 %v1824_v36 }
  0x2c   :  { %703 = vmatpush.bf16.msrb.mxu2 %v1832_v38 }
  0x2e   :  { %676 = vmatpush.bf16.msrb.mxu0 %v1815_v41 }
  0x2f   :  { %690 = vmatpush.bf16.msrb.mxu1 %v1823_v42 }
  0x30   :  { %704 = vmatpush.bf16.msrb.mxu2 %v1831_v44 }
  0x32   :  { %677 = vmatpush.bf16.msrb.mxu0 %v1814_v48 }
  0x33   :  { %691 = vmatpush.bf16.msrb.mxu1 %v1822_v49 }
  0x34   :  { %705 = vmatpush.bf16.msrb.mxu2 %v1830_v52 }
  0x36   :  { %678 = vmatpush.bf16.msrb.mxu0 %v1813_v59 }
  0x37   :  { %692 = vmatpush.bf16.msrb.mxu1 %v1821_v60 }
  0x38   :  { %706 = vmatpush.bf16.msrb.mxu2 %v1829_v61 }
  0x3a   :  { %679 = vmatpush.bf16.msrb.mxu0 %v1812_v4 }
  0x3b   :  { %693 = vmatpush.bf16.msrb.mxu1 %v1820_v5 }
  0x3c   :  { %707 = vmatpush.bf16.msrb.mxu2 %v1828_v10 }
  0x3e   :  { %680 = vmatpush.bf16.msrb.mxu0 %v1811_v16 }
  0x3f   :  { %694 = vmatpush.bf16.msrb.mxu1 %v1819_v18 }
  0x40   :  { %708 = vmatpush.bf16.msrb.mxu2 %v1827_v20 }
  0x42   :  { %681 = vmatpush.bf16.msrb.mxu0 %v1810_v27 }
  0x43   :  { %695 = vmatpush.bf16.msrb.mxu1 %v1818_v28 }
  0x44   :  { %709 = vmatpush.bf16.msrb.mxu2 %v1826_v29 }
  0x83   :  { %v74_v11 = vpop.xlane.xlu0 %73 }
  0x84   :  { %v2110_v15 = vmul.f32 0.0012755102, %v74_v11 }
  0x86   :  { %1850 = vrsqrt.f32 %v2110_v15  ;;  %vm100_vm1 = vcmp.eq.f32.partialorder %v2110_v15, inf  ;;  %v103_v55 = vand.u32 2147483648, %v2110_v15  ;;  %vm102_vm2 = vcmp.eq.f32.partialorder %v2110_v15, 0.0 }
  0x8b   :  { %v90_v30 = vpop.xlane.xlu0 %89 }
  0x8c   :  { %v1851_v32 = vpop.eup %1850  ;;  %v2149_v33 = vmul.f32 0.0012755102, %v90_v30 }
  0x8d   :  { %v94_v37 = vmul.f32 %v1851_v32, %v2110_v15 }
  0x8e   :  { %1852 = vrsqrt.f32 %v2149_v33  ;;  %vm112_vm3 = vcmp.eq.f32.partialorder %v2149_v33, inf  ;;  %vm114_vm4 = vcmp.eq.f32.partialorder %v2149_v33, 0.0 }
  0x8f   :  { %v95_v39 = vmul.f32 %v1851_v32, %v94_v37 }
  0x91   :  { %v96_v43 = vmul.f32 0.5, %v95_v39 }
  0x93   :  { %v97_v45 = vsub.f32 1.5, %v96_v43 }
  0x94   :  { %v1853_v47 = vpop.eup %1852 }
  0x95   :  { %v98_v50 = vmul.f32 %v1851_v32, %v97_v45  ;;  %v106_v51 = vmul.f32 %v1853_v47, %v2149_v33 }
  0x97   :  { %v99_v53 = vmul.f32 %v98_v50, %v2110_v15  ;;  %v107_v54 = vmul.f32 %v1853_v47, %v106_v51 }
  0x99   :  { %v101_v56 = vsel %vm100_vm1, %v2110_v15, %v99_v53  ;;  %v108_v57 = vmul.f32 0.5, %v107_v54  ;;  %v115_v15 = vand.u32 2147483648, %v2149_v33 }
  0x9a   :  { %v104_v58 = vsel %vm102_vm2, %v103_v55, %v101_v56 }
  0x9b   :  { %v117_v62 = vadd.f32 1e-08, %v104_v58  ;;  %v109_v63 = vsub.f32 1.5, %v108_v57 }
  0x9d   :  { %1854 = vrcp.f32 %v117_v62  ;;  %v110_v6 = vmul.f32 %v1853_v47, %v109_v63  ;;  %v130_v34 = vand.u32 2147483648, %v117_v62  ;;  %vm124_vm6 = vweird.f32 %v117_v62 }
  0x9e   :  { %v128_v36 = vand.u32 2147483647, %v117_v62 }
  0x9f   :  { %v111_v11 = vmul.f32 %v110_v6, %v2149_v33  ;;  %v131_v40 = vor.u32 1.1754944e-38, %v130_v34 }
  0xa0   :  { %vm129_vm8 = vcmp.eq.f32.partialorder %v128_v36, 8.507059e+37 }
  0xa1   :  { %v113_v19 = vsel %vm112_vm3, %v2149_v33, %v111_v11 }
  0xa2   :  { %v116_v21 = vsel %vm114_vm4, %v115_v15, %v113_v19 }
  0xa3   :  { %v1855_v23 = vpop.eup %1854  ;;  %v118_v25 = vadd.f32 1e-08, %v116_v21 }
  0xa4   :  { %v120_v26 = vmul.f32 %v1855_v23, %v117_v62  ;;  %vm125_vm5 = vweird.f32 %v1855_v23 }
  0xa5   :  { %1856 = vrcp.f32 %v118_v25  ;;  %vm126_vm7 = vmor %vm124_vm6, %vm125_vm5  ;;  %v151_v41 = vand.u32 2147483648, %v118_v25  ;;  %v149_v43 = vand.u32 2147483647, %v118_v25  ;;  %vm145_vm10 = vweird.f32 %v118_v25 }
  0xa6   :  { %v121_v30 = vsub.f32 1.0, %v120_v26 }
  0xa7   :  { %v152_v46 = vor.u32 1.1754944e-38, %v151_v41  ;;  %vm150_vm12 = vcmp.eq.f32.partialorder %v149_v43, 8.507059e+37 }
  0xa8   :  { %v122_v31 = vmul.f32 %v1855_v23, %v121_v30 }
  0xaa   :  { %v123_v32 = vadd.f32 %v1855_v23, %v122_v31 }
  0xab   :  { %v1857_v33 = vpop.eup %1856 }
  0xac   :  { %v141_v37 = vmul.f32 %v1857_v33, %v118_v25  ;;  %v127_v38 = vsel %vm126_vm7, %v1855_v23, %v123_v32  ;;  %vm146_vm9 = vweird.f32 %v1857_v33 }
  0xad   :  { %v132_v44 = vsel %vm129_vm8, %v131_v40, %v127_v38  ;;  %vm147_vm11 = vmor %vm145_vm10, %vm146_vm9 }
  0xae   :  { %v142_v39 = vsub.f32 1.0, %v141_v37  ;;  %v133_v47 = vmul.f32 %v132_v44, %v1945_v0  ;;  %v134_v50 = vmul.f32 %v132_v44, %v1950_v1  ;;  %v135_v51 = vmul.f32 %v132_v44, %v1955_v2 }
  0xaf   :  { %v136_v52 = vmul.f32 %v132_v44, %v1960_v3 }
  0xb0   :  { %v143_v42 = vmul.f32 %v1857_v33, %v142_v39 }
  0xb2   :  { %v144_v45 = vadd.f32 %v1857_v33, %v143_v42 }
  0xb4   :  { %v148_v48 = vsel %vm147_vm11, %v1857_v33, %v144_v45  ;;  %vm776_vm11 = vcmask 97280  }
  0xb5   :  { %v153_v49 = vsel %vm150_vm12, %v152_v46, %v148_v48  ;;  %vm1903_vm12 = vmmov 1  }
  0xb6   :  { %v154_v53 = vmul.f32 %v153_v49, %v1976_v8  ;;  %v155_v54 = vmul.f32 %v153_v49, %v1981_v9  ;;  %v156_v55 = vmul.f32 %v153_v49, %v1988_v12  ;;  %v157_v56 = vmul.f32 %v153_v49, %v1993_v13 }
  0xb7   :  { %v158_v1 = vmul.f32 %v153_v49, %v1998_v14  ;;  %v159_v2 = vmul.f32 %v153_v49, %v2018_v22  ;;  %v160_v3 = vmul.f32 %v153_v49, %v2040_v35  ;;  %v137_v8 = vmul.f32 %v132_v44, %v1971_v7  ;;  %v1847_v22 = vld [vmem:[%s2503_s4] ss:$0 sm:$0xff] }
  0xb8   :  { %v273_v57 = vpack.c.bf16 %v154_v53, %v133_v47  ;;  %v274_v58 = vpack.c.bf16 %v155_v54, %v134_v50  ;;  %v275_v0 = vpack.c.bf16 %v156_v55, %v135_v51  ;;  %v276_v59 = vpack.c.bf16 %v157_v56, %v136_v52 }
  0xb9   :  { %v138_v9 = vmul.f32 %v132_v44, %v2007_v17  ;;  %v139_v12 = vmul.f32 %v132_v44, %v2024_v24  ;;  %v277_v13 = vpack.c.bf16 %v158_v1, %v137_v8 }
  0xba   :  { %626 = vmatmul.bf16.vlgmr.msra.gmra.mxu0 %v273_v57  ;;  %640 = vmatmul.bf16.vlgmr.msra.gmra.mxu1 %v274_v58 }
  0xbb   :  { %654 = vmatmul.bf16.vlgmr.msra.gmra.mxu2 %v275_v0  ;;  %668 = vmatmul.bf16.vlgmr.msra.gmra.mxu3 %v276_v59  ;;  %v278_v60 = vpack.c.bf16 %v159_v2, %v138_v9  ;;  %v279_v61 = vpack.c.bf16 %v160_v3, %v139_v12  ;;  %v24_v59 = vlaneseq }
  0xca   :  { %682 = vmatmul.bf16.vlgmr.msrb.gmra.mxu0 %v277_v13  ;;  %696 = vmatmul.bf16.vlgmr.msrb.gmra.mxu1 %v278_v60  ;;  %v25_v13 = vshrl.u32 %v24_v59, 7 }
  0xcb   :  { %710 = vmatmul.bf16.vlgmr.msrb.gmra.mxu2 %v279_v61 }
  0xcc   :  { %vm29_vm2 = vcmp.lt.s32.totalorder %v25_v13, 4 }
 0x137   :  { %v627_v62 = vpop.f32.mrf.mxu0  ;;  %v641_v63 = vpop.f32.mrf.mxu1 }
 0x138   :  { %v628_v6 = vadd.f32 %v1847_v22, %v627_v62 }
 0x13a   :  { %v642_v15 = vadd.f32 %v641_v63, %v628_v6 }
 0x13e   :  { %v655_v4 = vpop.f32.mrf.mxu2  ;;  %v669_v7 = vpop.f32.mrf.mxu3 }
 0x13f   :  { %v629_v14 = vpop.f32.mrf.mxu0  ;;  %v643_v5 = vpop.f32.mrf.mxu1  ;;  %v656_v18 = vadd.f32 %v655_v4, %v642_v15 }
 0x140   :  { %v630_v35 = vadd.f32 %v1847_v22, %v629_v14 }
 0x141   :  { %v670_v25 = vadd.f32 %v669_v7, %v656_v18 }
 0x142   :  { %v644_v10 = vadd.f32 %v643_v5, %v630_v35 }
 0x146   :  { %v657_v17 = vpop.f32.mrf.mxu2  ;;  %v671_v19 = vpop.f32.mrf.mxu3 }
 0x147   :  { %v683_v24 = vpop.f32.mrf.mxu0  ;;  %v697_v11 = vpop.f32.mrf.mxu1  ;;  %v658_v16 = vadd.f32 %v657_v17, %v644_v10 }
 0x148   :  { %v684_v27 = vadd.f32 %v683_v24, %v670_v25 }
 0x149   :  { %v672_v21 = vadd.f32 %v671_v19, %v658_v16 }
 0x14a   :  { %v698_v31 = vadd.f32 %v697_v11, %v684_v27 }
 0x14e   :  { %v711_v20 = vpop.f32.mrf.mxu2 }
 0x14f   :  { %v685_v23 = vpop.f32.mrf.mxu0  ;;  %v699_v28 = vpop.f32.mrf.mxu1  ;;  %v712_v33 = vadd.f32 %v711_v20, %v698_v31 }
 0x150   :  { %v686_v26 = vadd.f32 %v685_v23, %v672_v21  ;;  %v1902_v23 = vmov 0.0  }
 0x151   :  { %v2254_v37 = vmax.f32 %v712_v33, 0.0  ;;  %v2271_v25 = vsel %vm29_vm2, 1.0, %v1902_v23 }
 0x152   :  { %v700_v29 = vadd.f32 %v699_v28, %v686_v26  ;;  %vm766_vm10 = vcmp.gt.f32.partialorder %v2271_v25, 0.5 }
 0x153   :  { %v718_v39 = vmul.f32 %v2254_v37, %v2254_v37 }
 0x155   :  { %v721_v40 = vsel %vm720_vm14, %v718_v39, 0.0 }
 0x156   :  { %v713_v30 = vpop.f32.mrf.mxu2 }
 0x157   :  { %v714_v32 = vadd.f32 %v713_v30, %v700_v29  ;;  %v28_v29 = vand.u32 127, %v24_v59 }
 0x159   :  { %v2250_v34 = vmax.f32 %v714_v32, 0.0  ;;  %vm35_vm7 = vcmp.lt.s32.totalorder %v28_v29, 8 }
 0x15b   :  { %v719_v36 = vmul.f32 %v2250_v34, %v2250_v34 }
 0x15d   :  { %v725_v38 = vsel %vm724_vm13, %v719_v36, 0.0 }
 0x15e   :  { %726 = vadd.xlane.f32.xlu1 %v725_v38 }
 0x166   :  { %722 = vadd.xlane.f32.xlu1 %v721_v40 }
 0x1d1   :  { %v727_v41 = vpop.xlane.xlu1 %726 }
 0x1d2   :  { %v2260_v42 = vadd.f32 -32.0, %v727_v41  ;;  %v868_v43 = vmul.f32 0.03125, %v727_v41 }
 0x1d4   :  { %v737_v44 = vand.u32 2147483647, %v2260_v42  ;;  %1858 = vrsqrt.f32 %v868_v43  ;;  %vm888_vm15 = vcmp.eq.f32.partialorder %v868_v43, inf  ;;  %vm890_vm1 = vcmp.eq.f32.partialorder %v868_v43, 0.0 }
 0x1d5   :  { %v891_v60 = vand.u32 2147483648, %v868_v43  ;;  %v731_v61 = vmax.f32 %v2260_v42, 0.0  ;;  %v733_v14 = vmul.f32 0.0, %v2260_v42  ;;  %vm765_vm6 = vcmp.gt.f32.partialorder %v2260_v42, 0.0 }
 0x1d6   :  { %v739_v45 = vsub.f32 0.0, %v737_v44  ;;  %v1904_v42 = vmov 1.0  }
 0x1d7   :  { %v735_v16 = vsub.f32 %v731_v61, %v733_v14 }
 0x1d8   :  { %v742_v46 = vmul.f32 1.442695, %v739_v45 }
 0x1d9   :  { %v723_v47 = vpop.xlane.xlu1 %722 }
 0x1da   :  { %v1859_v48 = vpop.eup %1858  ;;  %1860 = vpow2.f32 %v742_v46  ;;  %v2263_v49 = vadd.f32 -32.0, %v723_v47  ;;  %v867_v50 = vmul.f32 0.03125, %v723_v47  ;;  %v2282_v46 = vsel %vm35_vm7, 0.125, %v1902_v23 }
 0x1db   :  { %v882_v51 = vmul.f32 %v1859_v48, %v868_v43 }
 0x1dc   :  { %v736_v52 = vand.u32 2147483647, %v2263_v49  ;;  %1862 = vrsqrt.f32 %v867_v50  ;;  %vm876_vm4 = vcmp.eq.f32.partialorder %v867_v50, inf  ;;  %v879_v26 = vand.u32 2147483648, %v867_v50 }
 0x1dd   :  { %v883_v53 = vmul.f32 %v1859_v48, %v882_v51  ;;  %vm878_vm5 = vcmp.eq.f32.partialorder %v867_v50, 0.0  ;;  %v730_v31 = vmax.f32 %v2263_v49, 0.0  ;;  %v732_v32 = vmul.f32 %v2263_v49, %v2271_v25 }
 0x1de   :  { %v738_v54 = vsub.f32 0.0, %v736_v52  ;;  %vm764_vm9 = vcmp.gt.f32.partialorder %v2263_v49, 0.0 }
 0x1df   :  { %v884_v55 = vmul.f32 0.5, %v883_v53  ;;  %v1835_v53 = vld [vmem:[%s2505_s3 + $0x8] sm:$0xff] }
 0x1e0   :  { %v1861_v56 = vpop.eup %1860  ;;  %v740_v57 = vmul.f32 1.442695, %v738_v54 }
 0x1e1   :  { %v885_v58 = vsub.f32 1.5, %v884_v55  ;;  %v753_v0 = vadd.f32 1.0, %v1861_v56  ;;  %v756_v2 = vmul.f32 -0.5, %v1861_v56  ;;  %v759_v5 = vand.u32 2147483647, %v1861_v56 }
 0x1e2   :  { %v1863_v1 = vpop.eup %1862  ;;  %1864 = vpow2.f32 %v740_v57  ;;  %v1834_v57 = vld [vmem:[%s2505_s3] sm:$0xff] }
 0x1e3   :  { %v886_v3 = vmul.f32 %v1859_v48, %v885_v58  ;;  %v870_v8 = vmul.f32 %v1863_v1, %v867_v50  ;;  %1866 = vlog2.f32 %v753_v0  ;;  %v757_v62 = vadd.f32 1.0, %v756_v2 }
 0x1e4   :  { %vm760_vm3 = vcmp.lt.f32.partialorder %v759_v5, 0.0004427343 }
 0x1e5   :  { %v887_v9 = vmul.f32 %v886_v3, %v868_v43  ;;  %v871_v12 = vmul.f32 %v1863_v1, %v870_v8  ;;  %v758_v11 = vmul.f32 %v1861_v56, %v757_v62 }
 0x1e7   :  { %v889_v63 = vsel %vm888_vm15, %v868_v43, %v887_v9  ;;  %v872_v4 = vmul.f32 0.5, %v871_v12  ;;  %v734_v43 = vsub.f32 %v730_v31, %v732_v32  ;;  %vm771_vm15 = vmxor %vm765_vm6, %vm1903_vm12 }
 0x1e8   :  { %v1865_v22 = vpop.eup %1864  ;;  %v892_v7 = vsel %vm890_vm1, %v891_v60, %v889_v63  ;;  %vm768_vm1 = vmxor %vm764_vm9, %vm766_vm10  ;;  %v1712_v49 = vsel %vm771_vm15, 1.0, %v1902_v23 }
 0x1e9   :  { %v1867_v35 = vpop.eup %1866  ;;  %v873_v17 = vsub.f32 1.5, %v872_v4  ;;  %v744_v6 = vadd.f32 1.0, %v1865_v22  ;;  %v2268_v24 = vadd.f32 1e-08, %v892_v7  ;;  %v747_v18 = vmul.f32 -0.5, %v1865_v22  ;;  %vm770_vm2 = vmxor %vm768_vm1, %vm1903_vm12 }
 0x1ea   :  { %v755_v10 = vmul.f32 0.6931472, %v1867_v35  ;;  %v750_v33 = vand.u32 2147483647, %v1865_v22  ;;  %v1848_v7 = vld [vmem:[%s2503_s4 + $0x1] ss:$0 sm:$0xff] }
 0x1eb   :  { %v874_v15 = vmul.f32 %v1863_v1, %v873_v17  ;;  %1868 = vlog2.f32 %v744_v6  ;;  %v748_v28 = vadd.f32 1.0, %v747_v18  ;;  %v921_v1 = vand.u32 2147483648, %v2268_v24 }
 0x1ec   :  { %v761_v19 = vsel %vm760_vm3, %v758_v11, %v755_v10  ;;  %1870 = vrcp.f32 %v2268_v24  ;;  %vm751_vm8 = vcmp.lt.f32.partialorder %v750_v33, 0.0004427343  ;;  %v919_v3 = vand.u32 2147483647, %v2268_v24 }
 0x1ed   :  { %v875_v20 = vmul.f32 %v874_v15, %v867_v50  ;;  %v763_v21 = vadd.f32 %v761_v19, %v735_v16  ;;  %v749_v40 = vmul.f32 %v1865_v22, %v748_v28  ;;  %v922_v60 = vor.u32 1.1754944e-38, %v921_v1  ;;  %v852_v15 = vld [vmem:[%s2506_s1] sm:$0x1] }
 0x1ee   :  { %vm920_vm1 = vcmp.eq.f32.partialorder %v919_v3, 8.507059e+37  ;;  %v853_v18 = vmul.f32 0.9, %v852_v15 }
 0x1ef   :  { %v877_v27 = vsel %vm876_vm4, %v867_v50, %v875_v20  ;;  %1713 = vmatpush.msk.msrb.mxu3 %vm75_vm0, %v763_v21  ;;  %vm37_vm4 = vcmp.lt.s32.totalorder %v28_v29, 4 }
 0x1f0   :  { %v880_v30 = vsel %vm878_vm5, %v879_v26, %v877_v27  ;;  %v2311_v8 = vsel %vm37_vm4, 0.25, %v1902_v23 }
 0x1f1   :  { %v893_v36 = vadd.f32 1e-08, %v880_v30  ;;  %v1869_v38 = vpop.eup %1868 }
 0x1f2   :  { %v746_v39 = vmul.f32 0.6931472, %v1869_v38  ;;  %v1871_v41 = vpop.eup %1870 }
 0x1f3   :  { %1872 = vrcp.f32 %v893_v36  ;;  %v911_v47 = vmul.f32 %v1871_v41, %v2268_v24  ;;  %v906_v58 = vand.u32 2147483648, %v893_v36  ;;  %vm900_vm5 = vweird.f32 %v893_v36 }
 0x1f4   :  { %v752_v44 = vsel %vm751_vm8, %v749_v40, %v746_v39  ;;  %v904_v0 = vand.u32 2147483647, %v893_v36  ;;  %vm916_vm6 = vweird.f32 %v1871_v41  ;;  %vm915_vm8 = vweird.f32 %v2268_v24 }
 0x1f5   :  { %v762_v45 = vadd.f32 %v752_v44, %v734_v43  ;;  %v912_v51 = vsub.f32 1.0, %v911_v47  ;;  %v907_v9 = vor.u32 1.1754944e-38, %v906_v58  ;;  %vm917_vm9 = vmor %vm915_vm8, %vm916_vm6 }
 0x1f6   :  { %vm905_vm15 = vcmp.eq.f32.partialorder %v904_v0, 8.507059e+37 }
 0x1f7   :  { %798 = vmatpush.msrb.mxu3 %v762_v45  ;;  %v913_v55 = vmul.f32 %v1871_v41, %v912_v51 }
 0x1f8   :  { %1714 = vmatmul.msk.f32.vlgmr.msrb.gmra.mxu3 %vm776_vm11, %v2282_v46 }
 0x1f9   :  { %v1873_v48 = vpop.eup %1872  ;;  %1715 = vmatpush.msk.msra.mxu3 %vm75_vm0, %v1712_v49  ;;  %v914_v59 = vadd.f32 %v1871_v41, %v913_v55 }
 0x1fa   :  { %v896_v50 = vmul.f32 %v1873_v48, %v893_v36  ;;  %vm901_vm3 = vweird.f32 %v1873_v48 }
 0x1fb   :  { %1716 = vmatpush.msk.msra.mxu3 %vm770_vm2, %v1904_v42  ;;  %vm902_vm7 = vmor %vm900_vm5, %vm901_vm3  ;;  %v918_v12 = vsel %vm917_vm9, %v1871_v41, %v914_v59  ;;  %vm856_vm2 = vcmask 253952  }
 0x1fc   :  { %v897_v52 = vsub.f32 1.0, %v896_v50  ;;  %v923_v61 = vsel %vm920_vm1, %v922_v60, %v918_v12 }
 0x1fd   :  { %1718 = vmatpush.msk.msrb.mxu3 %vm75_vm0, %v2250_v34  ;;  %v924_v63 = vmul.f32 %v923_v61, %v2250_v34 }
 0x1fe   :  { %v898_v54 = vmul.f32 %v1873_v48, %v897_v52 }
 0x1ff   :  { %847 = vmatpush.msrb.mxu3 %v2254_v37 }
 0x200   :  { %1717 = vmatmul.msk.f32.vlgmr.msra.gmra.mxu3 %vm776_vm11, %v2282_v46  ;;  %v899_v56 = vadd.f32 %v1873_v48, %v898_v54 }
 0x201   :  { %953 = vmatpush.bf16.msra.mxu3 %v1835_v53 }
 0x202   :  { %v903_v2 = vsel %vm902_vm7, %v1873_v48, %v899_v56 }
 0x203   :  { %v908_v13 = vsel %vm905_vm15, %v907_v9, %v903_v2 }
 0x204   :  { %v909_v62 = vmul.f32 %v908_v13, %v2254_v37 }
 0x205   :  { %954 = vmatpush.bf16.msra.mxu3 %v1834_v57 }
 0x206   :  { %v929_v4 = vpack.c.bf16 %v924_v63, %v909_v62 }
 0x208   :  { %1719 = vmatmul.msk.f32.vlgmr.msrb.gmra.mxu3 %vm776_vm11, %v2311_v8 }
 0x210   :  { %1728 = vmatmul.msk.bf16.vlgmr.msra.gmra.mxu3 %vm720_vm14, %v929_v4 }
 0x27b   :  { %v2318_v14 = vpop.f32.mrf.mxu3 }
 0x283   :  { %v2320_v5 = vpop.f32.mrf.mxu3 }
 0x28b   :  { %v849_v22 = vpop.f32.mrf.mxu3 }
 0x28c   :  { %v854_v19 = vmul.f32 0.1, %v849_v22 }
 0x28e   :  { %v2343_v21 = vadd.f32 %v854_v19, %v853_v18 }
 0x290   :  { %v857_v26 = vsel %vm856_vm2, %v2343_v21, 0.0 }
 0x293   :  { %v956_v35 = vpop.f32.mrf.mxu3 }
 0x294   :  { %v957_v17 = vadd.f32 %v1848_v7, %v956_v35 }
 0x296   :  { %v2325_v6 = vmax.f32 %v957_v17, 0.0 }
 0x298   :  { %v963_v37 = vmul.f32 %v2325_v6, %v2325_v6 }
 0x29a   :  { %v965_v34 = vsel %vm720_vm14, %v963_v37, 0.0 }
 0x29b   :  { %v958_v24 = vpop.f32.mrf.mxu3  ;;  %966 = vadd.xlane.f32.xlu2 %v965_v34 }
 0x29c   :  { %v959_v10 = vadd.f32 %v1848_v7, %v958_v24 }
 0x29e   :  { %v2330_v11 = vmax.f32 %v959_v10, 0.0 }
 0x2a0   :  { %1738 = vmatpush.msk.msra.mxu2 %vm75_vm0, %v2330_v11  ;;  %v964_v16 = vmul.f32 %v2330_v11, %v2330_v11 }
 0x2a2   :  { %1081 = vmatpush.msra.mxu2 %v2325_v6  ;;  %v968_v20 = vsel %vm724_vm13, %v964_v16, 0.0 }
 0x2a3   :  { %1739 = vmatmul.msk.f32.vlgmr.msra.gmra.mxu2 %vm776_vm11, %v2311_v8  ;;  %969 = vadd.xlane.f32.xlu2 %v968_v20 }
 0x2ab   :  { %858 = vadd.xlane.f32.xlu2 %v857_v26 }
 0x30e   :  { %v967_v27 = vpop.xlane.xlu2 %966 }
 0x30f   :  { %v2347_v28 = vadd.f32 -32.0, %v967_v27  ;;  %v1100_v29 = vmul.f32 0.03125, %v967_v27 }
 0x311   :  { %v979_v30 = vand.u32 2147483647, %v2347_v28  ;;  %1874 = vrsqrt.f32 %v1100_v29  ;;  %vm1007_vm3 = vcmp.gt.f32.partialorder %v2347_v28, 0.0  ;;  %vm1109_vm8 = vcmp.eq.f32.partialorder %v1100_v29, inf }
 0x312   :  { %vm1009_vm5 = vmxor %vm1007_vm3, %vm766_vm10  ;;  %v1112_v59 = vand.u32 2147483648, %v1100_v29  ;;  %vm1111_vm9 = vcmp.eq.f32.partialorder %v1100_v29, 0.0 }
 0x313   :  { %v981_v31 = vsub.f32 0.0, %v979_v30  ;;  %vm1011_vm7 = vmxor %vm1009_vm5, %vm1903_vm12  ;;  %v973_v30 = vmax.f32 %v2347_v28, 0.0 }
 0x315   :  { %v983_v32 = vmul.f32 1.442695, %v981_v31  ;;  %v975_v31 = vmul.f32 %v2347_v28, %v2271_v25  ;;  %v1839_v28 = vld [vmem:[%s2505_s3 + $0x18] sm:$0xff] }
 0x316   :  { %v970_v33 = vpop.xlane.xlu2 %969 }
 0x317   :  { %v1875_v36 = vpop.eup %1874  ;;  %v2350_v38 = vadd.f32 -32.0, %v970_v33  ;;  %v1101_v39 = vmul.f32 0.03125, %v970_v33  ;;  %1876 = vpow2.f32 %v983_v32 }
 0x318   :  { %v1103_v40 = vmul.f32 %v1875_v36, %v1100_v29 }
 0x319   :  { %v980_v41 = vand.u32 2147483647, %v2350_v38  ;;  %1878 = vrsqrt.f32 %v1101_v39  ;;  %vm1008_vm4 = vcmp.gt.f32.partialorder %v2350_v38, 0.0  ;;  %v974_v17 = vmax.f32 %v2350_v38, 0.0 }
 0x31a   :  { %v1104_v43 = vmul.f32 %v1875_v36, %v1103_v40  ;;  %vm1012_vm6 = vmxor %vm1008_vm4, %vm1903_vm12  ;;  %vm1121_vm15 = vcmp.eq.f32.partialorder %v1101_v39, inf  ;;  %v1124_v37 = vand.u32 2147483648, %v1101_v39  ;;  %vm1123_vm1 = vcmp.eq.f32.partialorder %v1101_v39, 0.0 }
 0x31b   :  { %v982_v44 = vsub.f32 0.0, %v980_v41  ;;  %v1732_v48 = vsel %vm1012_vm6, 1.0, %v1902_v23  ;;  %v976_v15 = vmul.f32 0.0, %v2350_v38 }
 0x31c   :  { %v1105_v45 = vmul.f32 0.5, %v1104_v43  ;;  %1735 = vmatpush.msk.msrb.mxu3 %vm75_vm0, %v1732_v48 }
 0x31d   :  { %v985_v47 = vmul.f32 1.442695, %v982_v44  ;;  %v1877_v49 = vpop.eup %1876  ;;  %v978_v40 = vsub.f32 %v974_v17, %v976_v15 }
 0x31e   :  { %v1106_v50 = vsub.f32 1.5, %v1105_v45  ;;  %v859_v51 = vpop.xlane.xlu2 %858  ;;  %1736 = vmatpush.msk.msrb.mxu3 %vm1011_vm7, %v1904_v42  ;;  %v987_v57 = vadd.f32 1.0, %v1877_v49  ;;  %v990_v22 = vmul.f32 -0.5, %v1877_v49  ;;  %v993_v19 = vand.u32 2147483647, %v1877_v49 }
 0x31f   :  { %v1879_v52 = vpop.eup %1878  ;;  %1880 = vpow2.f32 %v985_v47  ;;  %v860_v53 = vmul.f32 0.03125, %v859_v51  ;;  %1737 = vmatmul.msk.f32.vlgmr.msrb.gmra.mxu3 %vm776_vm11, %v2282_v46  ;;  %v977_v45 = vsub.f32 %v973_v30, %v975_v31 }
 0x320   :  { %v1107_v54 = vmul.f32 %v1875_v36, %v1106_v50  ;;  %v1115_v55 = vmul.f32 %v1879_v52, %v1101_v39  ;;  %1882 = vlog2.f32 %v987_v57  ;;  %v991_v10 = vadd.f32 1.0, %v990_v22 }
 0x321   :  { %v861_v56 = vsub.f32 %v860_v53, %v2343_v21  ;;  %vm994_vm4 = vcmp.lt.f32.partialorder %v993_v19, 0.0004427343  ;;  %v1838_v53 = vld [vmem:[%s2505_s3 + $0x10] sm:$0xff]  ;;  %s1905_s3 = smov 1  }
 0x322   :  { %v1108_v58 = vmul.f32 %v1107_v54, %v1100_v29  ;;  %v1116_v0 = vmul.f32 %v1879_v52, %v1115_v55 }
 0x323   :  { %v862_v1 = vmul.f32 %v861_v56, %v861_v56 }
 0x324   :  { %v1110_v2 = vsel %vm1109_vm8, %v1100_v29, %v1108_v58  ;;  %v1117_v3 = vmul.f32 0.5, %v1116_v0 }
 0x325   :  { %v1881_v9 = vpop.eup %1880  ;;  %v1113_v12 = vsel %vm1111_vm9, %v1112_v59, %v1110_v2  ;;  %v863_v13 = vsel %vm856_vm2, %v862_v1, 0.0 }
 0x326   :  { %v2366_v60 = vadd.f32 1e-08, %v1113_v12  ;;  %v1118_v61 = vsub.f32 1.5, %v1117_v3  ;;  %864 = vadd.xlane.f32.xlu2 %v863_v13  ;;  %v996_v62 = vadd.f32 1.0, %v1881_v9  ;;  %v999_v4 = vmul.f32 -0.5, %v1881_v9  ;;  %v1883_v35 = vpop.eup %1882 }
 0x327   :  { %v1002_v18 = vand.u32 2147483647, %v1881_v9  ;;  %v989_v27 = vmul.f32 0.6931472, %v1883_v35 }
 0x328   :  { %1884 = vrcp.f32 %v2366_v60  ;;  %v1119_v63 = vmul.f32 %v1879_v52, %v1118_v61  ;;  %v1000_v24 = vadd.f32 1.0, %v999_v4  ;;  %v1139_v52 = vand.u32 2147483648, %v2366_v60  ;;  %v1849_v4 = vld [vmem:[%s2503_s4 + $0x2] ss:$0 sm:$0xff] }
 0x329   :  { %1886 = vlog2.f32 %v996_v62  ;;  %vm1003_vm3 = vcmp.lt.f32.partialorder %v1002_v18, 0.0004427343  ;;  %vm1133_vm6 = vweird.f32 %v2366_v60  ;;  %v1137_v54 = vand.u32 2147483647, %v2366_v60 }
 0x32a   :  { %v1120_v7 = vmul.f32 %v1119_v63, %v1101_v39  ;;  %v1001_v36 = vmul.f32 %v1881_v9, %v1000_v24  ;;  %v1140_v59 = vor.u32 1.1754944e-38, %v1139_v52  ;;  %v1083_v24 = vpop.f32.mrf.mxu2  ;;  %v1324_v52 = vld [vmem:[%s2506_s1 + $0x2] sm:$0x1] }
 0x32b   :  { %vm1138_vm9 = vcmp.eq.f32.partialorder %v1137_v54, 8.507059e+37  ;;  %v1088_v18 = vmul.f32 0.1, %v1083_v24 }
 0x32c   :  { %v1122_v34 = vsel %vm1121_vm15, %v1101_v39, %v1120_v7  ;;  %v992_v39 = vmul.f32 %v1877_v49, %v991_v10  ;;  %v1086_v10 = vld [vmem:[%s2506_s1 + $0x1] sm:$0x1] }
 0x32d   :  { %v1125_v16 = vsel %vm1123_vm1, %v1124_v37, %v1122_v34 }
 0x32e   :  { %v1885_v20 = vpop.eup %1884  ;;  %v1127_v26 = vadd.f32 1e-08, %v1125_v16  ;;  %v995_v43 = vsel %vm994_vm4, %v992_v39, %v989_v27  ;;  %v1087_v16 = vmul.f32 0.9, %v1086_v10 }
 0x32f   :  { %v1887_v29 = vpop.eup %1886  ;;  %v1129_v32 = vmul.f32 %v1885_v20, %v2366_v60  ;;  %v1005_v48 = vadd.f32 %v995_v43, %v977_v45  ;;  %vm1134_vm5 = vweird.f32 %v1885_v20 }
 0x330   :  { %1888 = vrcp.f32 %v1127_v26  ;;  %v998_v33 = vmul.f32 0.6931472, %v1887_v29  ;;  %vm1135_vm7 = vmor %vm1133_vm6, %vm1134_vm5  ;;  %v1154_v56 = vand.u32 2147483648, %v1127_v26  ;;  %v1152_v0 = vand.u32 2147483647, %v1127_v26 }
 0x331   :  { %v1130_v38 = vsub.f32 1.0, %v1129_v32  ;;  %vm1148_vm15 = vweird.f32 %v1127_v26 }
 0x332   :  { %v1004_v41 = vsel %vm1003_vm3, %v1001_v36, %v998_v33  ;;  %v1155_v3 = vor.u32 1.1754944e-38, %v1154_v56  ;;  %vm1153_vm3 = vcmp.eq.f32.partialorder %v1152_v0, 8.507059e+37 }
 0x333   :  { %v1006_v44 = vadd.f32 %v1004_v41, %v978_v40  ;;  %v1131_v47 = vmul.f32 %v1885_v20, %v1130_v38 }
 0x335   :  { %1733 = vmatpush.msk.msra.mxu0 %vm75_vm0, %v1006_v44  ;;  %v1132_v51 = vadd.f32 %v1885_v20, %v1131_v47  ;;  %v1837_v44 = vld [vmem:[%s2507_s5 + $0x8] sm:$0xff] }
 0x336   :  { %v1889_v50 = vpop.eup %1888 }
 0x337   :  { %1035 = vmatpush.msra.mxu0 %v1005_v48  ;;  %v1144_v49 = vmul.f32 %v1889_v50, %v1127_v26  ;;  %v1136_v57 = vsel %vm1135_vm7, %v1885_v20, %v1132_v51  ;;  %vm1149_vm8 = vweird.f32 %v1889_v50  ;;  %v1089_v20 = vadd.f32 %v1088_v18, %v1087_v16  ;;  %v1836_v51 = vld [vmem:[%s2507_s5] sm:$0xff] }
 0x338   :  { %1734 = vmatmul.msk.f32.vlgmr.msra.gmra.mxu0 %vm776_vm11, %v2282_v46  ;;  %v1141_v2 = vsel %vm1138_vm9, %v1140_v59, %v1136_v57  ;;  %vm1150_vm1 = vmor %vm1148_vm15, %vm1149_vm8  ;;  %v1325_v57 = vmul.f32 0.9, %v1324_v52  ;;  %vm1472_vm8 = vcmask 256000  }
 0x339   :  { %1191 = vmatpush.bf16.msrb.mxu0 %v1839_v28  ;;  %v1145_v55 = vsub.f32 1.0, %v1144_v49  ;;  %v1142_v13 = vmul.f32 %v1141_v2, %v2325_v6  ;;  %v1090_v26 = vsel %vm856_vm2, %v1089_v20, 0.0 }
 0x33b   :  { %v1146_v58 = vmul.f32 %v1889_v50, %v1145_v55 }
 0x33d   :  { %1192 = vmatpush.bf16.msrb.mxu0 %v1838_v53  ;;  %v1147_v1 = vadd.f32 %v1889_v50, %v1146_v58 }
 0x33f   :  { %v1151_v9 = vsel %vm1150_vm1, %v1889_v50, %v1147_v1 }
 0x340   :  { %v1156_v12 = vsel %vm1153_vm3, %v1155_v3, %v1151_v9 }
 0x341   :  { %v2389_v60 = vmul.f32 %v1156_v12, %v2330_v11 }
 0x343   :  { %v1167_v61 = vpack.c.bf16 %v2389_v60, %v1142_v13  ;;  %v1158_v59 = vpack.c.bf16 %v2389_v60, %v2389_v60 }
 0x345   :  { %1748 = vmatmul.msk.bf16.vlgmr.msrb.gmra.mxu0 %vm720_vm14, %v1167_v61 }
 0x3a2   :  { %v1060_v62 = vpop.f32.mrf.mxu3 }
 0x3a3   :  { %1441 = vrot.lane.b32.xlu2 %v1060_v62, %s1905_s3 }
 0x3b5   :  { %v2394_v63 = vpop.f32.mrf.mxu0 }
 0x3c2   :  { %v1194_v22 = vpop.f32.mrf.mxu0 }
 0x3c3   :  { %v1195_v7 = vadd.f32 %v1849_v4, %v1194_v22 }
 0x3c5   :  { %v1199_v6 = vmax.f32 %v1195_v7, 0.0 }
 0x3c7   :  { %v1201_v35 = vmul.f32 %v1199_v6, %v1199_v6 }
 0x3c9   :  { %v1203_v11 = vsel %vm720_vm14, %v1201_v35, 0.0 }
 0x3ca   :  { %v1196_v17 = vpop.f32.mrf.mxu0  ;;  %1204 = vadd.xlane.f32.xlu1 %v1203_v11 }
 0x3cb   :  { %v1197_v37 = vadd.f32 %v1849_v4, %v1196_v17 }
 0x3cd   :  { %v2400_v34 = vmax.f32 %v1197_v37, 0.0 }
 0x3cf   :  { %1758 = vmatpush.msk.msra.mxu3 %vm75_vm0, %v2400_v34  ;;  %v1202_v15 = vmul.f32 %v2400_v34, %v2400_v34 }
 0x3d1   :  { %1319 = vmatpush.msra.mxu3 %v1199_v6  ;;  %v1206_v19 = vsel %vm724_vm13, %v1202_v15, 0.0 }
 0x3d2   :  { %1207 = vadd.xlane.f32.xlu0 %v1206_v19  ;;  %1759 = vmatmul.msk.f32.vlgmr.msra.gmra.mxu3 %vm776_vm11, %v2311_v8 }
 0x3da   :  { %1091 = vadd.xlane.f32.xlu0 %v1090_v26 }
 0x43d   :  { %v1205_v27 = vpop.xlane.xlu1 %1204 }
 0x43e   :  { %v2413_v29 = vadd.f32 -32.0, %v1205_v27 }
 0x440   :  { %v1217_v30 = vand.u32 2147483647, %v2413_v29  ;;  %vm1245_vm13 = vcmp.gt.f32.partialorder %v2413_v29, 0.0  ;;  %v1211_v19 = vmax.f32 %v2413_v29, 0.0 }
 0x441   :  { %vm1247_vm5 = vmxor %vm1245_vm13, %vm766_vm10  ;;  %vm1458_vm10 = vcmask 1040384  }
 0x442   :  { %v1219_v31 = vsub.f32 0.0, %v1217_v30  ;;  %vm1249_vm7 = vmxor %vm1247_vm5, %vm1903_vm12 }
 0x444   :  { %v1221_v32 = vmul.f32 1.442695, %v1219_v31 }
 0x445   :  { %v1208_v33 = vpop.xlane.xlu0 %1207 }
 0x446   :  { %1890 = vpow2.f32 %v1221_v32  ;;  %v2416_v36 = vadd.f32 -32.0, %v1208_v33  ;;  %v2418_v39 = vmul.f32 0.03125, %v1208_v33 }
 0x448   :  { %v1218_v8 = vand.u32 2147483647, %v2416_v36  ;;  %1892 = vrsqrt.f32 %v2418_v39  ;;  %vm1246_vm4 = vcmp.gt.f32.partialorder %v2416_v36, 0.0  ;;  %v1212_v61 = vmax.f32 %v2416_v36, 0.0 }
 0x449   :  { %vm1250_vm6 = vmxor %vm1246_vm4, %vm1903_vm12  ;;  %vm1460_vm12 = vcmask 1041408   ;;  %v1214_v60 = vmul.f32 0.0, %v2416_v36  ;;  %vm1346_vm9 = vcmp.eq.f32.partialorder %v2418_v39, inf  ;;  %v1349_v7 = vand.u32 2147483648, %v2418_v39 }
 0x44a   :  { %v1220_v40 = vsub.f32 0.0, %v1218_v8  ;;  %v1752_v38 = vsel %vm1250_vm6, 1.0, %v1902_v23  ;;  %vm1348_vm15 = vcmp.eq.f32.partialorder %v2418_v39, 0.0  ;;  %vm1462_vm6 = vcmask 18432  }
 0x44b   :  { %1755 = vmatpush.msk.msrb.mxu2 %vm75_vm0, %v1752_v38  ;;  %v1216_v32 = vsub.f32 %v1212_v61, %v1214_v60 }
 0x44c   :  { %v2428_v41 = vpop.eup %1890  ;;  %v1223_v43 = vmul.f32 1.442695, %v1220_v40 }
 0x44d   :  { %v1092_v45 = vpop.xlane.xlu0 %1091  ;;  %1756 = vmatpush.msk.msrb.mxu2 %vm1249_vm7, %v1904_v42  ;;  %v1225_v23 = vadd.f32 1.0, %v2428_v41  ;;  %v1465_v42 = vrot.slane %v1089_v20, 7  ;;  %v1228_v9 = vmul.f32 -0.5, %v2428_v41  ;;  %v1231_v24 = vand.u32 2147483647, %v2428_v41 }
 0x44e   :  { %v1893_v47 = vpop.eup %1892  ;;  %1894 = vpow2.f32 %v1223_v43  ;;  %v1093_v48 = vmul.f32 0.03125, %v1092_v45  ;;  %1757 = vmatmul.msk.f32.vlgmr.msrb.gmra.mxu2 %vm776_vm11, %v2282_v46 }
 0x44f   :  { %v1340_v28 = vmul.f32 %v1893_v47, %v2418_v39  ;;  %1421 = vmatpush.bf16.msra.mxu2 %v1837_v44  ;;  %1896 = vlog2.f32 %v1225_v23  ;;  %v1470_v13 = vsel %vm1458_vm10, %v2343_v21, %v1465_v42  ;;  %v1229_v11 = vadd.f32 1.0, %v1228_v9 }
 0x450   :  { %v1094_v50 = vsub.f32 %v1093_v48, %v1089_v20  ;;  %v1213_v20 = vmul.f32 %v2413_v29, %v2271_v25  ;;  %vm1232_vm3 = vcmp.lt.f32.partialorder %v1231_v24, 0.0004427343  ;;  %v1841_v29 = vld [vmem:[%s2507_s5 + $0x18] sm:$0xff] }
 0x451   :  { %v1341_v49 = vmul.f32 %v1893_v47, %v1340_v28  ;;  %v1230_v31 = vmul.f32 %v2428_v41, %v1229_v11  ;;  %v1840_v41 = vld [vmem:[%s2507_s5 + $0x10] sm:$0xff]  ;;  %s1906_s5 = smov 2  }
 0x452   :  { %v1095_v53 = vmul.f32 %v1094_v50, %v1094_v50  ;;  %v1215_v8 = vsub.f32 %v1211_v19, %v1213_v20 }
 0x453   :  { %v1342_v54 = vmul.f32 0.5, %v1341_v49  ;;  %1422 = vmatpush.bf16.msra.mxu2 %v1836_v51 }
 0x454   :  { %v1895_v55 = vpop.eup %1894  ;;  %v1096_v56 = vsel %vm856_vm2, %v1095_v53, 0.0 }
 0x455   :  { %v1343_v58 = vsub.f32 1.5, %v1342_v54  ;;  %1097 = vadd.xlane.f32.xlu0 %v1096_v56  ;;  %v1321_v0 = vpop.f32.mrf.mxu3  ;;  %v1234_v1 = vadd.f32 1.0, %v1895_v55  ;;  %v1237_v3 = vmul.f32 -0.5, %v1895_v55  ;;  %v1897_v4 = vpop.eup %1896  ;;  %v1240_v37 = vand.u32 2147483647, %v1895_v55 }
 0x456   :  { %v1326_v2 = vmul.f32 0.1, %v1321_v0  ;;  %1777 = vmatmul.msk.bf16.vlgmr.msra.gmra.mxu2 %vm720_vm14, %v1158_v59  ;;  %v1227_v15 = vmul.f32 0.6931472, %v1897_v4 }
 0x457   :  { %v1344_v12 = vmul.f32 %v1893_v47, %v1343_v58  ;;  %1898 = vlog2.f32 %v1234_v1  ;;  %v1238_v35 = vadd.f32 1.0, %v1237_v3  ;;  %vm1241_vm1 = vcmp.lt.f32.partialorder %v1240_v37, 0.0004427343 }
 0x458   :  { %v2454_v62 = vadd.f32 %v1326_v2, %v1325_v57  ;;  %v1233_v36 = vsel %vm1232_vm3, %v1230_v31, %v1227_v15  ;;  %v865_v2 = vpop.xlane.xlu2 %864 }
 0x459   :  { %v1345_v22 = vmul.f32 %v1344_v12, %v2418_v39  ;;  %v1239_v30 = vmul.f32 %v1895_v55, %v1238_v35  ;;  %v1243_v25 = vadd.f32 %v1233_v36, %v1215_v8  ;;  %v866_v4 = vmul.f32 0.03125, %v865_v2 }
 0x45a   :  { %v1468_v6 = vrot.slane %v2454_v62, 6  ;;  %v1328_v21 = vsel %vm856_vm2, %v2454_v62, 0.0 }
 0x45b   :  { %v1347_v17 = vsel %vm1346_vm9, %v2418_v39, %v1345_v22  ;;  %1329 = vadd.xlane.f32.xlu1 %v1328_v21 }
 0x45c   :  { %v1350_v10 = vsel %vm1348_vm15, %v1349_v7, %v1347_v17  ;;  %v1471_v16 = vsel %vm1460_vm12, %v1470_v13, %v1468_v6 }
 0x45d   :  { %v1899_v18 = vpop.eup %1898  ;;  %v1351_v26 = vadd.f32 1e-08, %v1350_v10  ;;  %1473 = vst.msk [vmem:[%s2508_s6 + $0x3] sm:$0x7] %vm1472_vm8, %v1471_v16 }
 0x45e   :  { %v1236_v27 = vmul.f32 0.6931472, %v1899_v18 }
 0x45f   :  { %1900 = vrcp.f32 %v1351_v26  ;;  %v1363_v44 = vand.u32 2147483648, %v1351_v26  ;;  %v1361_v47 = vand.u32 2147483647, %v1351_v26  ;;  %vm1357_vm13 = vweird.f32 %v1351_v26 }
 0x460   :  { %v1242_v33 = vsel %vm1241_vm1, %v1239_v30, %v1236_v27  ;;  %v1442_v12 = vpop.permute.xlu2 %1441 }
 0x461   :  { %v1244_v39 = vadd.f32 %v1242_v33, %v1216_v32  ;;  %v1364_v28 = vor.u32 1.1754944e-38, %v1363_v44  ;;  %vm1362_vm5 = vcmp.eq.f32.partialorder %v1361_v47, 8.507059e+37 }
 0x463   :  { %1753 = vmatpush.msk.msra.mxu1 %vm75_vm0, %v1244_v39 }
 0x465   :  { %v1901_v40 = vpop.eup %1900  ;;  %1273 = vmatpush.msra.mxu1 %v1243_v25 }
 0x466   :  { %1754 = vmatmul.msk.f32.vlgmr.msra.gmra.mxu1 %vm776_vm11, %v2282_v46  ;;  %v1353_v38 = vmul.f32 %v1901_v40, %v1351_v26  ;;  %vm1358_vm0 = vweird.f32 %v1901_v40  ;;  %vm1436_vm11 = vcmask 7168  }
 0x467   :  { %1393 = vmatpush.bf16.msrb.mxu1 %v1841_v29  ;;  %vm1359_vm4 = vmor %vm1357_vm13, %vm1358_vm0  ;;  %v1448_v60 = vsel %vm1436_vm11, %v2320_v5, %v1442_v12 }
 0x468   :  { %v1354_v43 = vsub.f32 1.0, %v1353_v38 }
 0x46a   :  { %v1355_v45 = vmul.f32 %v1901_v40, %v1354_v43 }
 0x46b   :  { %1394 = vmatpush.bf16.msrb.mxu1 %v1840_v41 }
 0x46c   :  { %v1356_v48 = vadd.f32 %v1901_v40, %v1355_v45 }
 0x46e   :  { %v1360_v23 = vsel %vm1359_vm4, %v1901_v40, %v1356_v48 }
 0x46f   :  { %v1365_v50 = vsel %vm1362_vm5, %v1364_v28, %v1360_v23 }
 0x470   :  { %v1366_v46 = vmul.f32 %v1365_v50, %v2400_v34 }
 0x472   :  { %v1367_v51 = vpack.c.bf16 %v1366_v46, %v1366_v46 }
 0x474   :  { %1768 = vmatmul.msk.bf16.vlgmr.msrb.gmra.mxu1 %vm720_vm14, %v1367_v51  ;;  %vm1474_vm14 = vcmask 76800  }
 0x4c8   :  { %v1098_v3 = vpop.xlane.xlu0 %1097 }
 0x4c9   :  { %v1099_v13 = vmul.f32 0.03125, %v1098_v3 }
 0x4ce   :  { %v1330_v49 = vpop.xlane.xlu1 %1329 }
 0x4cf   :  { %v1331_v52 = vmul.f32 0.03125, %v1330_v49 }
 0x4d1   :  { %v1332_v53 = vsub.f32 %v1331_v52, %v2454_v62  ;;  %v1298_v42 = vpop.f32.mrf.mxu2 }
 0x4d2   :  { %1445 = vrot.lane.b32.xlu0 %v1298_v42, %s1906_s5 }
 0x4d3   :  { %v1333_v54 = vmul.f32 %v1332_v53, %v1332_v53 }
 0x4d5   :  { %v1334_v55 = vsel %vm856_vm2, %v1333_v54, 0.0  ;;  %vm1438_vm2 = vcmask 15360  }
 0x4d6   :  { %1335 = vadd.xlane.f32.xlu1 %v1334_v55 }
 0x4d9   :  { %v1424_v56 = vpop.f32.mrf.mxu2 }
 0x4e1   :  { %v1426_v57 = vpop.f32.mrf.mxu2 }
 0x4e3   :  { %v1275_v58 = vpop.f32.mrf.mxu1 }
 0x4e4   :  { %1433 = vrot.lane.b32.xlu2 %v1275_v58, %s1906_s5 }
 0x4ef   :  { %1429 = vrot.lane.b32.xlu1 %v2394_v63, %s1905_s3  ;;  %v1450_v63 = vsel %vm1436_vm11, %v866_v4, %v1099_v13 }
 0x4f1   :  { %v1396_v34 = vpop.f32.mrf.mxu1 }
 0x4f2   :  { %v1425_v0 = vadd.f32 %v1424_v56, %v1396_v34 }
 0x4f4   :  { %v1475_v1 = vsel %vm1474_vm14, %v1425_v0, -inf }
 0x4f9   :  { %v1398_v59 = vpop.f32.mrf.mxu1 }
 0x4fc   :  { %1476 = vmax.xlane.f32.xlu0 %v1475_v1 }
 0x53e   :  { %v1434_v35 = vpop.permute.xlu2 %1433 }
 0x544   :  { %v1446_v61 = vpop.permute.xlu0 %1445 }
 0x545   :  { %v1449_v22 = vsel %vm1438_vm2, %v1448_v60, %v1446_v61 }
 0x546   :  { %v1453_v21 = vrot.slane %v1449_v22, 7 }
 0x549   :  { %v1336_v9 = vpop.xlane.xlu1 %1335 }
 0x54a   :  { %v1337_v62 = vmul.f32 0.03125, %v1336_v9 }
 0x54c   :  { %v1451_v7 = vsel %vm1438_vm2, %v1450_v63, %v1337_v62 }
 0x54d   :  { %v1456_v17 = vrot.slane %v1451_v7, 6 }
 0x561   :  { %v1430_v6 = vpop.permute.xlu1 %1429 }
 0x562   :  { %v1437_v11 = vsel %vm1436_vm11, %v2318_v14, %v1430_v6 }
 0x563   :  { %v1439_v37 = vsel %vm1438_vm2, %v1437_v11, %v1434_v35 }
 0x564   :  { %v1459_v24 = vsel %vm1458_vm10, %v1439_v37, %v1453_v21 }
 0x565   :  { %v1461_v10 = vsel %vm1460_vm12, %v1459_v24, %v1456_v17 }
 0x566   :  { %1463 = vst.msk [vmem:[%s2508_s6] sm:$0x7] %vm1462_vm6, %v1461_v10 }
 0x56f   :  { %v1477_v5 = vpop.xlane.xlu0 %1476 }
 0x570   :  { %v1478_v15 = vsub.f32 %v1425_v0, %v1477_v5 }
 0x572   :  { %1479 = vst.msk [vmem:[%s2508_s6 + $0x6] sm:$0xf] %vm1474_vm14, %v1478_v15 }

</bundles_post_ra>
